<compile_context>
chip_gen: v6e
topology: v6e:2x2x1
jax: 0.10.0
libtpu: 0.0.40
codegen_flags: <defaults>
</compile_context>

<pallas_src>
import functools

import jax
import jax.numpy as jnp
from jax.experimental import pallas as pl
from jax.experimental.pallas import tpu as pltpu


def _round_up(n, m):
    return ((n + m - 1) // m) * m


def _pick_tile_b(B, tile_b):
    """Sublane-aligned batch tile; keep >= 2 grid steps when B allows (v7x megacore)."""
    if B < 128:
        return _round_up(max(B, 1), 8)
    tb = min(_round_up(tile_b, 128), _round_up(B, 128))
    if _round_up(B, tb) == tb and B >= 256:        # would collapse to 1 grid step
        tb = max(128, _round_up(tb // 2, 128))
    return tb


def mlp_kernel(x_ref,
               w1_ref, b1_ref,
               w2_ref, b2_ref,
               w3_ref, b3_ref,
               w4t_ref, b4t_ref,
               o_ref):
    tb, in_dim = x_ref.shape
    hidden = w1_ref.shape[1]
    out_dim = o_ref.shape[0]

    # Process the batch tile in 128-row sub-blocks: each (sb, hidden) f32
    # activation is ~16 vregs (no spills at large tb), and the final transpose
    # becomes a native (128,128) XLU op.
    sb = 128 if tb % 128 == 0 else tb
    n_sub = tb // sb

    # Hoist bias broadcasts out of the (statically unrolled) sub-block loop.
    b1_full = jnp.broadcast_to(b1_ref[...], (sb, hidden))      # (sb, hidden) f32
    b4_full = jnp.broadcast_to(b4t_ref[...], (out_dim, sb))    # (out_dim, sb) f32

    for s in range(n_sub):                       # static offsets -> free slices
        xs = x_ref[pl.ds(s * sb, sb), :]         # (sb, in_dim) f32

        # ---- Layer 1: Linear(in_dim -> hidden) + ReLU ----
        if in_dim <= 8:
            # Tiny contraction (K=3): VPU FMAs in f32, skip the MXU.
            h = b1_full
            for k in range(in_dim):              # static unroll at trace time
                h = h + xs[:, k:k + 1] * w1_ref[k:k + 1, :]
        else:
            h = jnp.dot(xs, w1_ref[...],
                        preferred_element_type=jnp.float32) + b1_ref[...]
        h = jnp.maximum(h, 0.0).astype(jnp.bfloat16)

        # ---- Layer 2: Linear(hidden -> hidden) + ReLU (bf16 MXU, f32 acc) ----
        h = jnp.dot(h, w2_ref[...], preferred_element_type=jnp.float32) + b2_ref[...]
        h = jnp.maximum(h, 0.0).astype(jnp.bfloat16)

        # ---- Layer 3: Linear(hidden -> hidden) + ReLU ----
        h = jnp.dot(h, w3_ref[...], preferred_element_type=jnp.float32) + b3_ref[...]
        h = jnp.maximum(h, 0.0)                  # stay f32 for the transpose (v5e VPU)

        # ---- Output layer, computed transposed ----
        # (out_pad, hidden) @ (hidden, sb) -> (out_pad, sb). The store below is
        # lane-dense and writes only the useful out_dim rows: no padded writeback.
        ht = jnp.transpose(h).astype(jnp.bfloat16)                     # (hidden, sb)
        ot = jnp.dot(w4t_ref[...], ht, preferred_element_type=jnp.float32)
        o_ref[:, pl.ds(s * sb, sb)] = (ot[:out_dim, :] + b4_full).astype(o_ref.dtype)


def prepare_params(params):
    """One-time preprocessing (hoisted out of the per-call hot path): bf16 casts
    for the MXU layers and transpose + sublane-pad of the output layer."""
    assert len(params) == 4, "kernel is specialized to hidden_layers=3 (4 Linear layers)"
    (w1, b1), (w2, b2), (w3, b3), (w4, b4) = params
    hidden = w1.shape[1]
    out_dim = w4.shape[1]
    out_pad = _round_up(out_dim, 8)              # pad sublane dim of transposed weight
    w4t = jnp.zeros((out_pad, hidden), jnp.bfloat16).at[:out_dim, :].set(
        jnp.transpose(w4).astype(jnp.bfloat16))
    b4t = jnp.transpose(b4)                      # (out_dim, 1) f32
    return {
        "w1": w1, "b1": b1,                      # f32, layer 1 runs on the VPU
        "w2": w2.astype(jnp.bfloat16), "b2": b2,
        "w3": w3.astype(jnp.bfloat16), "b3": b3,
        "w4t": w4t, "b4t": b4t,
    }


@functools.partial(jax.jit, static_argnames=("tile_b",))
def diffusion_mlp_forward(x, prep, tile_b=512):
    """x: (B, input_dim) f32. prep: output of prepare_params(). Returns (B, output_dim) f32."""
    B, in_dim = x.shape
    out_dim = prep["b4t"].shape[0]

    tb = _pick_tile_b(B, tile_b)
    Bp = _round_up(B, tb)
    xp = x if Bp == B else jnp.zeros((Bp, in_dim), x.dtype).at[:B].set(x)

    const = lambda i: (0, 0)   # weights/biases stay VMEM-resident across grid steps
    out_t = pl.pallas_call(
        mlp_kernel,
        out_shape=jax.ShapeDtypeStruct((out_dim, Bp), jnp.float32),
        grid=(Bp // tb,),
        in_specs=[
            pl.BlockSpec((tb, in_dim), lambda i: (i, 0)),             # x tile
            pl.BlockSpec(prep["w1"].shape, const), pl.BlockSpec(prep["b1"].shape, const),
            pl.BlockSpec(prep["w2"].shape, const), pl.BlockSpec(prep["b2"].shape, const),
            pl.BlockSpec(prep["w3"].shape, const), pl.BlockSpec(prep["b3"].shape, const),
            pl.BlockSpec(prep["w4t"].shape, const), pl.BlockSpec(prep["b4t"].shape, const),
        ],
        out_specs=pl.BlockSpec((out_dim, tb), lambda i: (0, i)),      # lane-dense store
        compiler_params=pltpu.CompilerParams(
            dimension_semantics=("parallel",)),                       # v7x megacore
    )(xp, prep["w1"], prep["b1"], prep["w2"], prep["b2"],
      prep["w3"], prep["b3"], prep["w4t"], prep["b4t"])

    # (out_dim, Bp) -> (B, out_dim): tiny slice + transpose (8*B bytes).
    return out_t[:, :B].T


def init_params(key, input_dim=3, output_dim=2, hidden_size=128, hidden_layers=3):
    """Deterministic init mirroring nn.Linear shapes.

    Weights are created as (in_features, out_features) (already transposed
    relative to PyTorch). Biases are kept 2D (1, out_features) for TPU layout.
    """
    dims = [input_dim] + [hidden_size] * hidden_layers + [output_dim]
    params = []
    for i in range(len(dims) - 1):
        fan_in, fan_out = dims[i], dims[i + 1]
        key, kw, kb = jax.random.split(key, 3)
        bound = 1.0 / (fan_in ** 0.5)  # PyTorch nn.Linear default uniform bound
        w = jax.random.uniform(kw, (fan_in, fan_out), jnp.float32, -bound, bound)
        b = jax.random.uniform(kb, (1, fan_out), jnp.float32, -bound, bound)
        params.append((w, b))
    return params


def reference_forward(x, params):
    """Pure-JAX reference mirroring the kernel's dtype policy
    (layer 1 in f32; hidden/output layers bf16 operands with f32 accumulation).
    Note: vs. a pure-f32 PyTorch DiffusionMLP the bf16 policy adds ~1e-2-level
    relative error; tighten by keeping operands f32 if exact parity is needed."""
    (w1, b1), (w2, b2), (w3, b3), (w4, b4) = params
    h = jnp.maximum(x @ w1 + b1, 0.0).astype(jnp.bfloat16)
    h = jnp.dot(h, w2.astype(jnp.bfloat16), preferred_element_type=jnp.float32) + b2
    h = jnp.maximum(h, 0.0).astype(jnp.bfloat16)
    h = jnp.dot(h, w3.astype(jnp.bfloat16), preferred_element_type=jnp.float32) + b3
    h = jnp.maximum(h, 0.0).astype(jnp.bfloat16)
    return jnp.dot(h, w4.astype(jnp.bfloat16), preferred_element_type=jnp.float32) + b4


if __name__ == "__main__":
    key = jax.random.PRNGKey(0)
    key, kx = jax.random.split(key)

    batch = 512                       # tile picker -> 2 grid steps of 256 rows
    input_dim, output_dim, hidden_size, hidden_layers = 3, 2, 128, 3

    x = jax.random.normal(kx, (batch, input_dim), dtype=jnp.float32)
    params = init_params(key, input_dim, output_dim, hidden_size, hidden_layers)
    prep = prepare_params(params)     # one-time weight cast / transpose (hoisted)

    out = diffusion_mlp_forward(x, prep, tile_b=512)
    out = jax.block_until_ready(out)

    ref = reference_forward(x, params)
    assert out.shape == (batch, output_dim), out.shape
    assert jnp.allclose(out, ref, atol=1e-3, rtol=1e-3), \
        float(jnp.max(jnp.abs(out - ref)))

    print("KERNEL_OK")
</pallas_src>

<mosaic_0001>
module attributes {stable_mosaic.version = 11 : i64} {
  func.func @mlp_kernel(%arg0: i32, %arg1: memref<256x3xf32, #tpu.memory_space<vmem>>, %arg2: memref<3x128xf32, #tpu.memory_space<vmem>>, %arg3: memref<1x128xf32, #tpu.memory_space<vmem>>, %arg4: memref<128x128xbf16, #tpu.memory_space<vmem>>, %arg5: memref<1x128xf32, #tpu.memory_space<vmem>>, %arg6: memref<128x128xbf16, #tpu.memory_space<vmem>>, %arg7: memref<1x128xf32, #tpu.memory_space<vmem>>, %arg8: memref<8x128xbf16, #tpu.memory_space<vmem>>, %arg9: memref<2x1xf32, #tpu.memory_space<vmem>>, %arg10: memref<2x256xf32, #tpu.memory_space<vmem>>) attributes {dimension_semantics = [#tpu.dimension_semantics<parallel>], iteration_bounds = array<i64: 2>, scalar_prefetch = 0 : i64, scratch_operands = 0 : i64, tpu.core_type = #tpu.core_type<tc>, window_params = [{transform_indices = @transform_0, window_bounds = array<i64: 256, 3>}, {pipeline_mode = #tpu.pipeline_mode<synchronous>, transform_indices = @transform_1, window_bounds = array<i64: 3, 128>}, {pipeline_mode = #tpu.pipeline_mode<synchronous>, transform_indices = @transform_2, window_bounds = array<i64: 1, 128>}, {pipeline_mode = #tpu.pipeline_mode<synchronous>, transform_indices = @transform_3, window_bounds = array<i64: 128, 128>}, {pipeline_mode = #tpu.pipeline_mode<synchronous>, transform_indices = @transform_4, window_bounds = array<i64: 1, 128>}, {pipeline_mode = #tpu.pipeline_mode<synchronous>, transform_indices = @transform_5, window_bounds = array<i64: 128, 128>}, {pipeline_mode = #tpu.pipeline_mode<synchronous>, transform_indices = @transform_6, window_bounds = array<i64: 1, 128>}, {pipeline_mode = #tpu.pipeline_mode<synchronous>, transform_indices = @transform_7, window_bounds = array<i64: 8, 128>}, {pipeline_mode = #tpu.pipeline_mode<synchronous>, transform_indices = @transform_8, window_bounds = array<i64: 2, 1>}, {transform_indices = @transform_9, window_bounds = array<i64: 2, 256>}]} {
    %c0 = arith.constant 0 : index
    %c0_0 = arith.constant 0 : index
    %0 = vector.load %arg3[%c0, %c0_0] : memref<1x128xf32, #tpu.memory_space<vmem>>, vector<1x128xf32>
    %1 = vector.shape_cast %0 : vector<1x128xf32> to vector<1x128xf32>
    %2 = vector.broadcast %1 : vector<1x128xf32> to vector<128x128xf32>
    %c0_1 = arith.constant 0 : index
    %c0_2 = arith.constant 0 : index
    %3 = vector.load %arg9[%c0_1, %c0_2] : memref<2x1xf32, #tpu.memory_space<vmem>>, vector<2x1xf32>
    %4 = vector.shape_cast %3 : vector<2x1xf32> to vector<2x1xf32>
    %5 = vector.broadcast %4 : vector<2x1xf32> to vector<2x128xf32>
    %c0_3 = arith.constant 0 : index
    %c0_4 = arith.constant 0 : index
    %6 = vector.load %arg1[%c0_3, %c0_4] : memref<256x3xf32, #tpu.memory_space<vmem>>, vector<128x3xf32>
    %7 = vector.extract_strided_slice %6 {offsets = [0, 0], sizes = [128, 1], strides = [1, 1]} : vector<128x3xf32> to vector<128x1xf32>
    %c0_5 = arith.constant 0 : index
    %c0_6 = arith.constant 0 : index
    %8 = vector.load %arg2[%c0_5, %c0_6] : memref<3x128xf32, #tpu.memory_space<vmem>>, vector<1x128xf32>
    %9 = vector.broadcast %7 : vector<128x1xf32> to vector<128x128xf32>
    %10 = vector.broadcast %8 : vector<1x128xf32> to vector<128x128xf32>
    %11 = arith.mulf %9, %10 : vector<128x128xf32>
    %12 = arith.addf %2, %11 : vector<128x128xf32>
    %13 = vector.extract_strided_slice %6 {offsets = [0, 1], sizes = [128, 1], strides = [1, 1]} : vector<128x3xf32> to vector<128x1xf32>
    %c1 = arith.constant 1 : index
    %c0_7 = arith.constant 0 : index
    %14 = vector.load %arg2[%c1, %c0_7] : memref<3x128xf32, #tpu.memory_space<vmem>>, vector<1x128xf32>
    %15 = vector.broadcast %13 : vector<128x1xf32> to vector<128x128xf32>
    %16 = vector.broadcast %14 : vector<1x128xf32> to vector<128x128xf32>
    %17 = arith.mulf %15, %16 : vector<128x128xf32>
    %18 = arith.addf %12, %17 : vector<128x128xf32>
    %19 = vector.extract_strided_slice %6 {offsets = [0, 2], sizes = [128, 1], strides = [1, 1]} : vector<128x3xf32> to vector<128x1xf32>
    %c2 = arith.constant 2 : index
    %c0_8 = arith.constant 0 : index
    %20 = vector.load %arg2[%c2, %c0_8] : memref<3x128xf32, #tpu.memory_space<vmem>>, vector<1x128xf32>
    %21 = vector.broadcast %19 : vector<128x1xf32> to vector<128x128xf32>
    %22 = vector.broadcast %20 : vector<1x128xf32> to vector<128x128xf32>
    %23 = arith.mulf %21, %22 : vector<128x128xf32>
    %24 = arith.addf %18, %23 : vector<128x128xf32>
    %cst = arith.constant 0.000000e+00 : f32
    %25 = vector.broadcast %cst : f32 to vector<128x128xf32>
    %26 = arith.maximumf %24, %25 : vector<128x128xf32>
    %27 = arith.truncf %26 : vector<128x128xf32> to vector<128x128xbf16>
    %c0_9 = arith.constant 0 : index
    %c0_10 = arith.constant 0 : index
    %28 = vector.load %arg4[%c0_9, %c0_10] : memref<128x128xbf16, #tpu.memory_space<vmem>>, vector<128x128xbf16>
    %cst_11 = arith.constant dense<0.000000e+00> : vector<128x128xf32>
    %29 = tpu.matmul %27, %28, %cst_11 {dimension_numbers = #tpu.dot_dimension_numbers<[1], [0], [0], [1], [0, 0, 1, 1], [], []>} : vector<128x128xbf16>, vector<128x128xbf16>, vector<128x128xf32> -> vector<128x128xf32>
    %c0_12 = arith.constant 0 : index
    %c0_13 = arith.constant 0 : index
    %30 = vector.load %arg5[%c0_12, %c0_13] : memref<1x128xf32, #tpu.memory_space<vmem>>, vector<1x128xf32>
    %31 = vector.broadcast %30 : vector<1x128xf32> to vector<128x128xf32>
    %32 = arith.addf %29, %31 : vector<128x128xf32>
    %cst_14 = arith.constant 0.000000e+00 : f32
    %33 = vector.broadcast %cst_14 : f32 to vector<128x128xf32>
    %34 = arith.maximumf %32, %33 : vector<128x128xf32>
    %35 = arith.truncf %34 : vector<128x128xf32> to vector<128x128xbf16>
    %c0_15 = arith.constant 0 : index
    %c0_16 = arith.constant 0 : index
    %36 = vector.load %arg6[%c0_15, %c0_16] : memref<128x128xbf16, #tpu.memory_space<vmem>>, vector<128x128xbf16>
    %cst_17 = arith.constant dense<0.000000e+00> : vector<128x128xf32>
    %37 = tpu.matmul %35, %36, %cst_17 {dimension_numbers = #tpu.dot_dimension_numbers<[1], [0], [0], [1], [0, 0, 1, 1], [], []>} : vector<128x128xbf16>, vector<128x128xbf16>, vector<128x128xf32> -> vector<128x128xf32>
    %c0_18 = arith.constant 0 : index
    %c0_19 = arith.constant 0 : index
    %38 = vector.load %arg7[%c0_18, %c0_19] : memref<1x128xf32, #tpu.memory_space<vmem>>, vector<1x128xf32>
    %39 = vector.broadcast %38 : vector<1x128xf32> to vector<128x128xf32>
    %40 = arith.addf %37, %39 : vector<128x128xf32>
    %cst_20 = arith.constant 0.000000e+00 : f32
    %41 = vector.broadcast %cst_20 : f32 to vector<128x128xf32>
    %42 = arith.maximumf %40, %41 : vector<128x128xf32>
    %43 = tpu.transpose %42, [1, 0] : vector<128x128xf32> -> vector<128x128xf32>
    %44 = arith.truncf %43 : vector<128x128xf32> to vector<128x128xbf16>
    %c0_21 = arith.constant 0 : index
    %c0_22 = arith.constant 0 : index
    %45 = vector.load %arg8[%c0_21, %c0_22] : memref<8x128xbf16, #tpu.memory_space<vmem>>, vector<8x128xbf16>
    %cst_23 = arith.constant dense<0.000000e+00> : vector<8x128xf32>
    %46 = tpu.matmul %45, %44, %cst_23 {dimension_numbers = #tpu.dot_dimension_numbers<[1], [0], [0], [1], [0, 0, 1, 1], [], []>} : vector<8x128xbf16>, vector<128x128xbf16>, vector<8x128xf32> -> vector<8x128xf32>
    %47 = vector.extract_strided_slice %46 {offsets = [0, 0], sizes = [2, 128], strides = [1, 1]} : vector<8x128xf32> to vector<2x128xf32>
    %48 = arith.addf %47, %5 : vector<2x128xf32>
    %c0_24 = arith.constant 0 : index
    %c0_25 = arith.constant 0 : index
    %49 = vector.load %arg10[%c0_24, %c0_25] : memref<2x256xf32, #tpu.memory_space<vmem>>, vector<2x128xf32>
    tpu.vector_store %arg10[%c0_24, %c0_25], %48 {strides = array<i32>} : memref<2x256xf32, #tpu.memory_space<vmem>>, vector<2x128xf32>,
    %c128 = arith.constant 128 : index
    %c0_26 = arith.constant 0 : index
    %50 = vector.load %arg1[%c128, %c0_26] : memref<256x3xf32, #tpu.memory_space<vmem>>, vector<128x3xf32>
    %51 = vector.extract_strided_slice %50 {offsets = [0, 0], sizes = [128, 1], strides = [1, 1]} : vector<128x3xf32> to vector<128x1xf32>
    %c0_27 = arith.constant 0 : index
    %c0_28 = arith.constant 0 : index
    %52 = vector.load %arg2[%c0_27, %c0_28] : memref<3x128xf32, #tpu.memory_space<vmem>>, vector<1x128xf32>
    %53 = vector.broadcast %51 : vector<128x1xf32> to vector<128x128xf32>
    %54 = vector.broadcast %52 : vector<1x128xf32> to vector<128x128xf32>
    %55 = arith.mulf %53, %54 : vector<128x128xf32>
    %56 = arith.addf %2, %55 : vector<128x128xf32>
    %57 = vector.extract_strided_slice %50 {offsets = [0, 1], sizes = [128, 1], strides = [1, 1]} : vector<128x3xf32> to vector<128x1xf32>
    %c1_29 = arith.constant 1 : index
    %c0_30 = arith.constant 0 : index
    %58 = vector.load %arg2[%c1_29, %c0_30] : memref<3x128xf32, #tpu.memory_space<vmem>>, vector<1x128xf32>
    %59 = vector.broadcast %57 : vector<128x1xf32> to vector<128x128xf32>
    %60 = vector.broadcast %58 : vector<1x128xf32> to vector<128x128xf32>
    %61 = arith.mulf %59, %60 : vector<128x128xf32>
    %62 = arith.addf %56, %61 : vector<128x128xf32>
    %63 = vector.extract_strided_slice %50 {offsets = [0, 2], sizes = [128, 1], strides = [1, 1]} : vector<128x3xf32> to vector<128x1xf32>
    %c2_31 = arith.constant 2 : index
    %c0_32 = arith.constant 0 : index
    %64 = vector.load %arg2[%c2_31, %c0_32] : memref<3x128xf32, #tpu.memory_space<vmem>>, vector<1x128xf32>
    %65 = vector.broadcast %63 : vector<128x1xf32> to vector<128x128xf32>
    %66 = vector.broadcast %64 : vector<1x128xf32> to vector<128x128xf32>
    %67 = arith.mulf %65, %66 : vector<128x128xf32>
    %68 = arith.addf %62, %67 : vector<128x128xf32>
    %cst_33 = arith.constant 0.000000e+00 : f32
    %69 = vector.broadcast %cst_33 : f32 to vector<128x128xf32>
    %70 = arith.maximumf %68, %69 : vector<128x128xf32>
    %71 = arith.truncf %70 : vector<128x128xf32> to vector<128x128xbf16>
    %c0_34 = arith.constant 0 : index
    %c0_35 = arith.constant 0 : index
    %72 = vector.load %arg4[%c0_34, %c0_35] : memref<128x128xbf16, #tpu.memory_space<vmem>>, vector<128x128xbf16>
    %cst_36 = arith.constant dense<0.000000e+00> : vector<128x128xf32>
    %73 = tpu.matmul %71, %72, %cst_36 {dimension_numbers = #tpu.dot_dimension_numbers<[1], [0], [0], [1], [0, 0, 1, 1], [], []>} : vector<128x128xbf16>, vector<128x128xbf16>, vector<128x128xf32> -> vector<128x128xf32>
    %c0_37 = arith.constant 0 : index
    %c0_38 = arith.constant 0 : index
    %74 = vector.load %arg5[%c0_37, %c0_38] : memref<1x128xf32, #tpu.memory_space<vmem>>, vector<1x128xf32>
    %75 = vector.broadcast %74 : vector<1x128xf32> to vector<128x128xf32>
    %76 = arith.addf %73, %75 : vector<128x128xf32>
    %cst_39 = arith.constant 0.000000e+00 : f32
    %77 = vector.broadcast %cst_39 : f32 to vector<128x128xf32>
    %78 = arith.maximumf %76, %77 : vector<128x128xf32>
    %79 = arith.truncf %78 : vector<128x128xf32> to vector<128x128xbf16>
    %c0_40 = arith.constant 0 : index
    %c0_41 = arith.constant 0 : index
    %80 = vector.load %arg6[%c0_40, %c0_41] : memref<128x128xbf16, #tpu.memory_space<vmem>>, vector<128x128xbf16>
    %cst_42 = arith.constant dense<0.000000e+00> : vector<128x128xf32>
    %81 = tpu.matmul %79, %80, %cst_42 {dimension_numbers = #tpu.dot_dimension_numbers<[1], [0], [0], [1], [0, 0, 1, 1], [], []>} : vector<128x128xbf16>, vector<128x128xbf16>, vector<128x128xf32> -> vector<128x128xf32>
    %c0_43 = arith.constant 0 : index
    %c0_44 = arith.constant 0 : index
    %82 = vector.load %arg7[%c0_43, %c0_44] : memref<1x128xf32, #tpu.memory_space<vmem>>, vector<1x128xf32>
    %83 = vector.broadcast %82 : vector<1x128xf32> to vector<128x128xf32>
    %84 = arith.addf %81, %83 : vector<128x128xf32>
    %cst_45 = arith.constant 0.000000e+00 : f32
    %85 = vector.broadcast %cst_45 : f32 to vector<128x128xf32>
    %86 = arith.maximumf %84, %85 : vector<128x128xf32>
    %87 = tpu.transpose %86, [1, 0] : vector<128x128xf32> -> vector<128x128xf32>
    %88 = arith.truncf %87 : vector<128x128xf32> to vector<128x128xbf16>
    %c0_46 = arith.constant 0 : index
    %c0_47 = arith.constant 0 : index
    %89 = vector.load %arg8[%c0_46, %c0_47] : memref<8x128xbf16, #tpu.memory_space<vmem>>, vector<8x128xbf16>
    %cst_48 = arith.constant dense<0.000000e+00> : vector<8x128xf32>
    %90 = tpu.matmul %89, %88, %cst_48 {dimension_numbers = #tpu.dot_dimension_numbers<[1], [0], [0], [1], [0, 0, 1, 1], [], []>} : vector<8x128xbf16>, vector<128x128xbf16>, vector<8x128xf32> -> vector<8x128xf32>
    %91 = vector.extract_strided_slice %90 {offsets = [0, 0], sizes = [2, 128], strides = [1, 1]} : vector<8x128xf32> to vector<2x128xf32>
    %92 = arith.addf %91, %5 : vector<2x128xf32>
    %c0_49 = arith.constant 0 : index
    %c128_50 = arith.constant 128 : index
    %93 = vector.load %arg10[%c0_49, %c128_50] : memref<2x256xf32, #tpu.memory_space<vmem>>, vector<2x128xf32>
    tpu.vector_store %arg10[%c0_49, %c128_50], %92 {strides = array<i32>} : memref<2x256xf32, #tpu.memory_space<vmem>>, vector<2x128xf32>,
    return
  }
  func.func @transform_0(%arg0: i32) -> (i32, i32) {
    %c0_i32 = arith.constant 0 : i32
    %c0_i32_0 = arith.constant 0 : i32
    return %arg0, %c0_i32 : i32, i32
  }
  func.func @transform_1(%arg0: i32) -> (i32, i32) {
    %c0_i32 = arith.constant 0 : i32
    %c0_i32_0 = arith.constant 0 : i32
    %c0_i32_1 = arith.constant 0 : i32
    return %c0_i32, %c0_i32_0 : i32, i32
  }
  func.func @transform_2(%arg0: i32) -> (i32, i32) {
    %c0_i32 = arith.constant 0 : i32
    %c0_i32_0 = arith.constant 0 : i32
    %c0_i32_1 = arith.constant 0 : i32
    return %c0_i32, %c0_i32_0 : i32, i32
  }
  func.func @transform_3(%arg0: i32) -> (i32, i32) {
    %c0_i32 = arith.constant 0 : i32
    %c0_i32_0 = arith.constant 0 : i32
    %c0_i32_1 = arith.constant 0 : i32
    return %c0_i32, %c0_i32_0 : i32, i32
  }
  func.func @transform_4(%arg0: i32) -> (i32, i32) {
    %c0_i32 = arith.constant 0 : i32
    %c0_i32_0 = arith.constant 0 : i32
    %c0_i32_1 = arith.constant 0 : i32
    return %c0_i32, %c0_i32_0 : i32, i32
  }
  func.func @transform_5(%arg0: i32) -> (i32, i32) {
    %c0_i32 = arith.constant 0 : i32
    %c0_i32_0 = arith.constant 0 : i32
    %c0_i32_1 = arith.constant 0 : i32
    return %c0_i32, %c0_i32_0 : i32, i32
  }
  func.func @transform_6(%arg0: i32) -> (i32, i32) {
    %c0_i32 = arith.constant 0 : i32
    %c0_i32_0 = arith.constant 0 : i32
    %c0_i32_1 = arith.constant 0 : i32
    return %c0_i32, %c0_i32_0 : i32, i32
  }
  func.func @transform_7(%arg0: i32) -> (i32, i32) {
    %c0_i32 = arith.constant 0 : i32
    %c0_i32_0 = arith.constant 0 : i32
    %c0_i32_1 = arith.constant 0 : i32
    return %c0_i32, %c0_i32_0 : i32, i32
  }
  func.func @transform_8(%arg0: i32) -> (i32, i32) {
    %c0_i32 = arith.constant 0 : i32
    %c0_i32_0 = arith.constant 0 : i32
    %c0_i32_1 = arith.constant 0 : i32
    return %c0_i32, %c0_i32_0 : i32, i32
  }
  func.func @transform_9(%arg0: i32) -> (i32, i32) {
    %c0_i32 = arith.constant 0 : i32
    %c0_i32_0 = arith.constant 0 : i32
    return %c0_i32, %arg0 : i32, i32
  }
}

</mosaic_0001>

<bundles_post_ra>
// kernel: diffusion_mlp_forward.1
= control target key start
LH: loop header
LB: loop body
LE: loop exit
PB: predicated region body
PF: predicated region fallthrough
CT: control target
= control target key end

     0   :  { %14 = vsyncpa [#allocation3], 0  ;;  %s3248_s0 = inlined_call_operand.vmem [shape: f32[512,3], index: 0, kind: input, shape index: {}]   ;;  %s3249_s1 = inlined_call_operand.vmem [shape: f32[3,128], index: 1, kind: input, shape index: {}]   ;;  %s3250_s2 = inlined_call_operand.vmem [shape: f32[1,128], index: 2, kind: input, shape index: {}]   ;;  %s3251_s3 = inlined_call_operand.vmem [shape: bf16[128,128], index: 3, kind: input, shape index: {}]   ;;  %s3252_s4 = inlined_call_operand.vmem [shape: f32[1,128], index: 4, kind: input, shape index: {}]   ;;  %s3253_s5 = inlined_call_operand.vmem [shape: bf16[128,128], index: 5, kind: input, shape index: {}]   ;;  %s3254_s6 = inlined_call_operand.vmem [shape: f32[1,128], index: 6, kind: input, shape index: {}]   ;;  %s3255_s7 = inlined_call_operand.vmem [shape: bf16[8,128], index: 7, kind: input, shape index: {}]   ;;  %s3256_s8 = inlined_call_operand.vmem [shape: f32[2,1], index: 8, kind: input, shape index: {}]   ;;  %s3257_s9 = inlined_call_operand.hbm [shape: f32[2,512], index: 9, kind: output, shape index: {}]  }
   0x1   :  { %16 = vsyncpa [#allocation3 + $0x1], 0  ;;  %s2591_s30 = smov 0   ;;  %s2593_s10 = smov 0  }
   0x2   :  { %s2595_s11 = smov 0   ;;  %s2597_s12 = smov 0  }
   0x3 LB: > { %s2612_s13 = sadd.s32 4294967295, %s2533_s12   ;;  %s2058_s14 = sadd.s32 4294967294, %s2533_s12   ;;  %s2533_s12 = sphi %s2597_s12, %s3263_s12   ;;  %s2529_s11 = sphi %s2595_s11, %s3262_s11   ;;  %s2525_s10 = sphi %s2593_s10, %s3261_s10   ;;  %s2521_s30 = sphi %s2591_s30, %s3260_s30  }
   0x4   : > { %s2616_s15 = sadd.s32 1, %s2533_s12   ;;  %s223_s16 = sadd.s32 1, %s2529_s11 }
   0x5   : > { %s220_s17 = ssub.s32 %s2533_s12, %s2616_s15  ;;  %p233_p0 = scmp.ne.s32.totalorder %s2529_s11, %s2525_s10 }
   0x6   : > { %p221_p1 = scmp.eq.s32.totalorder %s220_s17, 0  ;;  %p234_p2 = scmp.eq.s32.totalorder %s2612_s13, 1 }
   0x7   : > { %p239_p3 = scmp.ne.s32.totalorder %s2525_s10, %s2521_s30  ;;  %p240_p4 = scmp.eq.s32.totalorder %s2058_s14, 1 }
   0x8   : > { %s2627_s18 = scalar_select %p221_p1, %s2529_s11, %s223_s16  }
   0x9   : > { %p2629_p5 = por %p234_p2, %p233_p0  ;;  %p2633_p6 = por %p240_p4, %p239_p3 }
   0xa   : > { %p2061_p7 = scmp.ge.s32.totalorder %s2533_s12, 1  ;;  %p291_p8 = scmp.lt.s32.totalorder %s2533_s12, 3 }
   0xc   : > { %p292_p9 = pnand %p2061_p7, %p291_p8 }
   0xd   : > { %s2063_s21 = sshll.u32 (!%p292_p9), %s2612_s13, 5  ;;  %s324_s27 = sand.u32 (!%p292_p9), 1, %s2525_s10  }
   0xe   : > { %295 = sbr.rel (%p292_p9) target bundleno = 1511 (0x5e7), region = 56  ;;  %p328_p10 = scmp.lt.s32.totalorder (!%p292_p9), %s2063_s21, 63 }
   0xf   : > { %s2062_s28 = sshll.u32 (!%p292_p9), %s324_s27, 2  ;;  %s2113_s14 = sshll.u32 (!%p292_p9), %s2612_s13, 6 }
  0x10   : > { %s326_s29 = scalar_lea.vmem (!%p292_p9), [#allocation2], %s2062_s28  ;;  %s2540_s13 = smov (!%p292_p9), [#allocation2]  }
  0x11   : > { %s1999_s16 = sshll.u32 (!%p292_p9), %s326_s29, 4  ;;  %s2477_s24 = sshll.u32 (!%p292_p9), %s2540_s13, 4  ;;  %s3209_s16 = int_to_ptr.vmem [resolvable:$true] %s1999_s16  ;;  %s2478_s24 = int_to_ptr.vmem [resolvable:$false] %s2477_s24 }
  0x12   : > { %s2473_s23 = scalar_lea.vmem (!%p292_p9), %s3209_s16, 64  ;;  %s2479_s26 = scalar_lea.vmem (!%p292_p9), %s2478_s24, 128 }
  0x13   : > { %v2535_v0 = vmov 2   ;;  %v2536_v1 = vmov 0   ;;  %s3265_s21 = smov (!%p328_p10, %s2063_s21), 63  ;;  %v2537_v8 = vmov 1   ;;  %v2441_v10 = vld [vmem:[%s3251_s3 + $0x38] sm:$0xff]   ;;  %v2442_v11 = vld [vmem:[%s3251_s3 + $0x30] sm:$0xff]   ;;  %p2474_p11 = scmp.ne.s32.totalorder %s3209_s16, %s2473_s23 }
  0x14   : > { %2411 = vset.pattern.permute.xlu0 %v2535_v0  ;;  %2408 = vset.pattern.permute.xlu1 %v2536_v1  ;;  %s2064_s22 = sshll.u32 %s3265_s21, 3  ;;  %v2443_v13 = vld [vmem:[%s3251_s3 + $0x28] sm:$0xff]   ;;  %v2444_v16 = vld [vmem:[%s3251_s3 + $0x20] sm:$0xff]   ;;  %v2445_v18 = vld [vmem:[%s3251_s3 + $0x18] sm:$0xff]   ;;  %vm2539_vm0 = vmmov 0   ;;  %p2480_p0 = scmp.lt.s32.totalorder %s3209_s16, %s2478_s24 }
  0x15   : > { %s2645_s25 = scalar_lea.vmem %s3248_s0, %s2064_s22  ;;  %2196 = vmatprep.subr.bf16.mxu0 %v2441_v10  ;;  %v2446_v19 = vld [vmem:[%s3251_s3 + $0x10] sm:$0xff]   ;;  %v2447_v20 = vld [vmem:[%s3251_s3 + $0x8] sm:$0xff]   ;;  %v2448_v21 = vld [vmem:[%s3251_s3] sm:$0xff]   ;;  %s3207_s22 = scalar_lea.hbm %s3257_s9, %s2113_s14 }
  0x16   : > { %v350_v2 = vld [vmem:[%s2645_s25 + $0x10] sm:$0xff]  ;;  %v349_v3 = vld [vmem:[%s2645_s25 + $0x8] sm:$0xff]  ;;  %v351_v4 = vld [vmem:[%s2645_s25 + $0x18] sm:$0xff]  ;;  %2197 = vmatpush3.bf16.msra.mxu0 %v2441_v10  ;;  %p2475_p12 = pnand %p2474_p11, %p2629_p5  ;;  %p2481_p1 = scmp.lt.s32.totalorder %s2479_s26, %s2473_s23 }
  0x17   : > { %377 = vperm.xlu1 %2408, %v350_v2   ;;  %588 = vperm.xlu0 %2411, %v349_v3   ;;  %v352_v5 = vld [vmem:[%s2645_s25 + $0x20] sm:$0xff]  ;;  %v355_v6 = vld [vmem:[%s2645_s25 + $0x38] sm:$0xff]  ;;  %v2653_v7 = vld [vmem:[%s2645_s25 + $0x48] sm:$0xff] }
  0x18   : > { %v348_v9 = vld [vmem:[%s2645_s25] sm:$0xff]  ;;  %v353_v12 = vld [vmem:[%s2645_s25 + $0x28] sm:$0xff]  ;;  %2198 = vmatprep.subr.bf16.mxu0 %v2442_v11  ;;  %v354_v14 = vld [vmem:[%s2645_s25 + $0x30] sm:$0xff]  ;;  %p2476_p13 = pneg %p2475_p12  ;;  %p2482_p2 = por %p2481_p1, %p2480_p0 }
  0x19   : > { %v2674_v15 = vld [vmem:[%s2645_s25 + $0x60] sm:$0xff]  ;;  %v2681_v17 = vld [vmem:[%s2645_s25 + $0x78] sm:$0xff]  ;;  %v358_v24 = vld [vmem:[%s2645_s25 + $0x50] sm:$0xff] }
  0x1a   : > { %2199 = vmatpush3.bf16.msra.mxu0 %v2442_v11  ;;  %v356_v22 = vld [vmem:[%s2645_s25 + $0x40] sm:$0xff]  ;;  %v359_v23 = vld [vmem:[%s2645_s25 + $0x58] sm:$0xff]  ;;  %v361_v25 = vld [vmem:[%s2645_s25 + $0x68] sm:$0xff]  ;;  %p2483_p3 = pnand %p2482_p2, %p2476_p13 }
  0x1b   : > { %382 = vperm.xlu1 %2408, %v351_v4   ;;  %600 = vperm.xlu0 %2411, %v352_v5   ;;  %v1167_v26 = vld [vmem:[%s2645_s25 + $0x88] sm:$0xff]  ;;  %v2711_v27 = vld [vmem:[%s2645_s25 + $0xa0] sm:$0xff]  ;;  %v2716_v28 = vld [vmem:[%s2645_s25 + $0xb8] sm:$0xff] }
  0x1c   : > { %2200 = vmatprep.subr.bf16.mxu0 %v2443_v13  ;;  %v2720_v29 = vld [vmem:[%s2645_s25 + $0xc8] sm:$0xff]  ;;  %v362_v30 = vld [vmem:[%s2645_s25 + $0x70] sm:$0xff]  ;;  %v2732_v31 = vld [vmem:[%s2645_s25 + $0xe0] sm:$0xff] }
  0x1d   : > { %v2736_v32 = vld [vmem:[%s2645_s25 + $0xf8] sm:$0xff]  ;;  %v1166_v33 = vld [vmem:[%s2645_s25 + $0x80] sm:$0xff]  ;;  %v2748_v39 = vld [vmem:[%s2645_s25 + $0xa8] sm:$0xff] }
  0x1e   : > { %2201 = vmatpush3.bf16.msra.mxu0 %v2443_v13  ;;  %v1169_v36 = vld [vmem:[%s2645_s25 + $0x98] sm:$0xff]  ;;  %v1168_v40 = vld [vmem:[%s2645_s25 + $0x90] sm:$0xff]  ;;  %v2755_v43 = vld [vmem:[%s2645_s25 + $0xc0] sm:$0xff] }
  0x1f   : > { %2409 = vset.pattern.permute.xlu1 %v2537_v8  ;;  %612 = vperm.xlu0 %2411, %v355_v6   ;;  %v2761_v46 = vld [vmem:[%s2645_s25 + $0xd8] sm:$0xff]  ;;  %v2771_v57 = vld [vmem:[%s3249_s1] ss:$0 sm:$0xff]  ;;  %v2785_v61 = vld [vmem:[%s3249_s1 + $0x1] ss:$0 sm:$0xff] }
  0x20   : > { %487 = vperm.xlu1 %2409, %v349_v3   ;;  %2202 = vmatprep.subr.bf16.mxu0 %v2444_v16  ;;  %v2780_v60 = vld [vmem:[%s3250_s2] ss:$0 sm:$0xff]  ;;  %v2802_v11 = vld [vmem:[%s3249_s1 + $0x2] ss:$0 sm:$0xff] }
  0x22   : > { %2203 = vmatpush3.bf16.msra.mxu0 %v2444_v16 }
  0x23   : > { %620 = vperm.xlu0 %2411, %v2653_v7   ;;  %2204 = vmatprep.subr.bf16.mxu0 %v2445_v18 }
  0x24   : > { %491 = vperm.xlu1 %2409, %v350_v2  }
  0x26   : > { %2205 = vmatpush3.bf16.msra.mxu0 %v2445_v18 }
  0x27   : > { %2418 = vset.pattern.permute.xlu0 %v2536_v1  ;;  %2206 = vmatprep.subr.bf16.mxu0 %v2446_v19 }
  0x28   : > { %2410 = vset.pattern.permute.xlu1 %v2535_v0  ;;  %367 = vperm.xlu0 %2418, %v348_v9  }
  0x29   : > { %584 = vperm.xlu1 %2410, %v348_v9  }
  0x2a   : > { %2207 = vmatpush3.bf16.msra.mxu0 %v2446_v19 }
  0x2b   : > { %2208 = vmatprep.subr.bf16.mxu0 %v2447_v20 }
  0x2c   : > { %372 = vperm.xlu0 %2418, %v349_v3   ;;  %v2792_v3 = vld [vmem:[%s2645_s25 + $0xb0] sm:$0xff] }
  0x2d   : > { %592 = vperm.xlu1 %2410, %v350_v2  }
  0x2e   : > { %2209 = vmatpush3.bf16.msra.mxu0 %v2447_v20 }
  0x2f   : > { %2210 = vmatprep.subr.bf16.mxu0 %v2448_v21 }
  0x30   : > { %387 = vperm.xlu0 %2418, %v352_v5  }
  0x31   : > { %596 = vperm.xlu1 %2410, %v351_v4  }
  0x32   : > { %2211 = vmatpush3.bf16.msra.mxu0 %v2448_v21 }
  0x34   : > { %402 = vperm.xlu0 %2418, %v355_v6  }
  0x35   : > { %2412 = vset.pattern.permute.xlu1 %v2536_v1 }
  0x36   : > { %392 = vperm.xlu1 %2412, %v353_v12  }
  0x38   : > { %412 = vperm.xlu0 %2418, %v2653_v7  }
  0x3a   : > { %397 = vperm.xlu1 %2412, %v354_v14  }
  0x3c   : > { %427 = vperm.xlu0 %2418, %v2674_v15  }
  0x3e   : > { %2413 = vset.pattern.permute.xlu1 %v2537_v8 }
  0x3f   : > { %499 = vperm.xlu1 %2413, %v352_v5  }
  0x40   : > { %442 = vperm.xlu0 %2418, %v2681_v17  }
  0x43   : > { %507 = vperm.xlu1 %2413, %v354_v14  }
  0x44   : > { %2420 = vset.pattern.permute.xlu0 %v2537_v8 }
  0x45   : > { %483 = vperm.xlu0 %2420, %v348_v9  }
  0x47   : > { %511 = vperm.xlu1 %2413, %v355_v6  }
  0x49   : > { %495 = vperm.xlu0 %2420, %v351_v4  }
  0x4b   : > { %2414 = vset.pattern.permute.xlu1 %v2535_v0 }
  0x4c   : > { %604 = vperm.xlu1 %2414, %v353_v12  }
  0x4d   : > { %503 = vperm.xlu0 %2420, %v353_v12  }
  0x50   : > { %608 = vperm.xlu1 %2414, %v354_v14  }
  0x51   : > { %515 = vperm.xlu0 %2420, %v356_v22  }
  0x54   : > { %2415 = vset.pattern.permute.xlu1 %v2536_v1 }
  0x55   : > { %407 = vperm.xlu1 %2415, %v356_v22   ;;  %527 = vperm.xlu0 %2420, %v359_v23  }
  0x59   : > { %417 = vperm.xlu1 %2415, %v358_v24   ;;  %535 = vperm.xlu0 %2420, %v361_v25  }
  0x5d   : > { %422 = vperm.xlu1 %2415, %v359_v23   ;;  %2422 = vset.pattern.permute.xlu0 %v2535_v0 }
  0x5e   : > { %632 = vperm.xlu0 %2422, %v2674_v15  }
  0x61   : > { %2416 = vset.pattern.permute.xlu1 %v2537_v8 }
  0x62   : > { %519 = vperm.xlu1 %2416, %v2653_v7   ;;  %644 = vperm.xlu0 %2422, %v2681_v17  }
  0x66   : > { %523 = vperm.xlu1 %2416, %v358_v24   ;;  %1406 = vperm.xlu0 %2422, %v1167_v26  }
  0x6a   : > { %2417 = vset.pattern.permute.xlu1 %v2535_v0  ;;  %1418 = vperm.xlu0 %2422, %v2711_v27  }
  0x6b   : > { %616 = vperm.xlu1 %2417, %v356_v22  }
  0x6e   : > { %1430 = vperm.xlu0 %2422, %v2716_v28  }
  0x6f   : > { %624 = vperm.xlu1 %2417, %v358_v24  }
  0x72   : > { %1438 = vperm.xlu0 %2422, %v2720_v29  }
  0x73   : > { %628 = vperm.xlu1 %2417, %v359_v23  }
  0x76   : > { %2433 = vset.pattern.permute.xlu0 %v2536_v1 }
  0x77   : > { %2419 = vset.pattern.permute.xlu1 %v2536_v1  ;;  %1190 = vperm.xlu0 %2433, %v1167_v26  }
  0x78   : > { %432 = vperm.xlu1 %2419, %v361_v25  }
  0x7b   : > { %1205 = vperm.xlu0 %2433, %v2711_v27  }
  0x7c   : > { %437 = vperm.xlu1 %2419, %v362_v30  }
  0x7f   : > { %1220 = vperm.xlu0 %2433, %v2716_v28  }
  0x80   : > { %2421 = vset.pattern.permute.xlu1 %v2537_v8 }
  0x81   : > { %531 = vperm.xlu1 %2421, %v2674_v15  }
  0x83   : > { %1230 = vperm.xlu0 %2433, %v2720_v29  }
  0x85   : > { %539 = vperm.xlu1 %2421, %v362_v30  }
  0x87   : > { %1245 = vperm.xlu0 %2433, %v2732_v31  }
  0x89   : > { %543 = vperm.xlu1 %2421, %v2681_v17  }
  0x8b   : > { %1260 = vperm.xlu0 %2433, %v2736_v32  }
  0x8d   : > { %2423 = vset.pattern.permute.xlu1 %v2535_v0 }
  0x8e   : > { %636 = vperm.xlu1 %2423, %v361_v25  }
  0x8f   : > { %2435 = vset.pattern.permute.xlu0 %v2537_v8 }
  0x90   : > { %1301 = vperm.xlu0 %2435, %v1166_v33  }
  0x92   : > { %v378_v34 = vpop.permute.xlu1 %377  ;;  %640 = vperm.xlu1 %2423, %v362_v30   ;;  %v589_v35 = vpop.permute.xlu0 %588 }
  0x93   : > { %v451_v6 = vmul.f32 %v2771_v57, %v378_v34  ;;  %v652_v14 = vmul.f32 %v2802_v11, %v589_v35 }
  0x94   : > { %1313 = vperm.xlu0 %2435, %v1169_v36  }
  0x95   : > { %v467_v18 = vadd.f32 %v2780_v60, %v451_v6 }
  0x96   : > { %v383_v37 = vpop.permute.xlu1 %382  ;;  %2424 = vset.pattern.permute.xlu1 %v2536_v1  ;;  %v2745_v38 = vpop.permute.xlu0 %600 }
  0x97   : > { %1185 = vperm.xlu1 %2424, %v1166_v33   ;;  %v452_v15 = vmul.f32 %v2771_v57, %v383_v37 }
  0x98   : > { %1321 = vperm.xlu0 %2435, %v2748_v39  }
  0x99   : > { %v468_v34 = vadd.f32 %v2780_v60, %v452_v15 }
  0x9a   : > { %v2752_v41 = vpop.permute.xlu0 %612 }
  0x9b   : > { %v488_v42 = vpop.permute.xlu1 %487  ;;  %1195 = vperm.xlu1 %2424, %v1168_v40  }
  0x9c   : > { %1333 = vperm.xlu0 %2435, %v2755_v43   ;;  %v551_v4 = vmul.f32 %v2785_v61, %v488_v42 }
  0x9e   : > { %v2758_v44 = vpop.permute.xlu0 %620 }
  0x9f   : > { %v492_v45 = vpop.permute.xlu1 %491  ;;  %1200 = vperm.xlu1 %2424, %v1169_v36  }
  0xa0   : > { %1345 = vperm.xlu0 %2435, %v2761_v46   ;;  %v552_v12 = vmul.f32 %v2785_v61, %v492_v45 }
  0xa3   : > { %v368_v47 = vpop.permute.xlu0 %367  ;;  %2425 = vset.pattern.permute.xlu1 %v2537_v8 }
  0xa4   : > { %1305 = vperm.xlu1 %2425, %v1167_v26   ;;  %v585_v48 = vpop.permute.xlu1 %584  ;;  %v449_v5 = vmul.f32 %v2771_v57, %v368_v47  ;;  %v568_v26 = vadd.f32 %v552_v12, %v467_v18 }
  0xa5   : > { %v651_v23 = vmul.f32 %v2802_v11, %v585_v48 }
  0xa6   : > { %v465_v16 = vadd.f32 %v2780_v60, %v449_v5 }
  0xa7   : > { %v373_v49 = vpop.permute.xlu0 %372 }
  0xa8   : > { %1309 = vperm.xlu1 %2425, %v1168_v40   ;;  %v593_v50 = vpop.permute.xlu1 %592  ;;  %v450_v58 = vmul.f32 %v2771_v57, %v373_v49 }
  0xa9   : > { %v653_v19 = vmul.f32 %v2802_v11, %v593_v50 }
  0xaa   : > { %v466_v63 = vadd.f32 %v2780_v60, %v450_v58 }
  0xab   : > { %v388_v51 = vpop.permute.xlu0 %387 }
  0xac   : > { %2426 = vset.pattern.permute.xlu1 %v2535_v0  ;;  %v597_v52 = vpop.permute.xlu1 %596  ;;  %v453_v7 = vmul.f32 %v2771_v57, %v388_v51  ;;  %v567_v10 = vadd.f32 %v551_v4, %v466_v63 }
  0xad   : > { %1402 = vperm.xlu1 %2426, %v1166_v33   ;;  %v654_v42 = vmul.f32 %v2802_v11, %v597_v52 }
  0xae   : > { %v469_v20 = vadd.f32 %v2780_v60, %v453_v7  ;;  %v668_v25 = vadd.f32 %v652_v14, %v567_v10 }
  0xaf   : > { %v403_v53 = vpop.permute.xlu0 %402 }
  0xb0   : > { %v456_v30 = vmul.f32 %v2771_v57, %v403_v53  ;;  %v684_v51 = vmax.f32 %v668_v25, 0.0  ;;  %v655_v53 = vmul.f32 %v2802_v11, %v2745_v38 }
  0xb1   : > { %1410 = vperm.xlu1 %2426, %v1168_v40   ;;  %v393_v54 = vpop.permute.xlu1 %392  ;;  %v669_v40 = vadd.f32 %v653_v19, %v568_v26 }
  0xb2   : > { %v454_v35 = vmul.f32 %v2771_v57, %v393_v54  ;;  %v472_v54 = vadd.f32 %v2780_v60, %v456_v30 }
  0xb3   : > { %v2766_v55 = vpop.permute.xlu0 %412  ;;  %v685_v5 = vmax.f32 %v669_v40, 0.0 }
  0xb4   : > { %v470_v52 = vadd.f32 %v2780_v60, %v454_v35 }
  0xb5   : > { %1414 = vperm.xlu1 %2426, %v1169_v36   ;;  %v398_v56 = vpop.permute.xlu1 %397 }
  0xb6   : > { %v455_v45 = vmul.f32 %v2771_v57, %v398_v56 }
  0xb7   : > { %v2774_v59 = vpop.permute.xlu0 %427 }
  0xb8   : > { %v471_v6 = vadd.f32 %v2780_v60, %v455_v45 }
  0xb9   : > { %2427 = vset.pattern.permute.xlu1 %v2536_v1 }
  0xba   : > { %1210 = vperm.xlu1 %2427, %v2748_v39   ;;  %v500_v62 = vpop.permute.xlu1 %499 }
  0xbb   : > { %v2789_v2 = vpop.permute.xlu0 %442  ;;  %v554_v21 = vmul.f32 %v2785_v61, %v500_v62 }
  0xbd   : > { %v570_v47 = vadd.f32 %v554_v21, %v469_v20 }
  0xbe   : > { %1215 = vperm.xlu1 %2427, %v2792_v3   ;;  %v508_v9 = vpop.permute.xlu1 %507 }
  0xbf   : > { %v556_v58 = vmul.f32 %v2785_v61, %v508_v9  ;;  %v671_v7 = vadd.f32 %v655_v53, %v570_v47 }
  0xc0   : > { %v484_v13 = vpop.permute.xlu0 %483 }
  0xc1   : > { %v550_v17 = vmul.f32 %v2785_v61, %v484_v13  ;;  %v572_v14 = vadd.f32 %v556_v58, %v471_v6 }
  0xc2   : > { %2428 = vset.pattern.permute.xlu1 %v2537_v8  ;;  %v512_v22 = vpop.permute.xlu1 %511 }
  0xc3   : > { %v566_v24 = vadd.f32 %v550_v17, %v465_v16  ;;  %1317 = vperm.xlu1 %2428, %v2711_v27   ;;  %v557_v27 = vmul.f32 %v2785_v61, %v512_v22  ;;  %v658_v17 = vmul.f32 %v2802_v11, %v2752_v41 }
  0xc4   : > { %v496_v33 = vpop.permute.xlu0 %495 }
  0xc5   : > { %v553_v36 = vmul.f32 %v2785_v61, %v496_v33  ;;  %v667_v37 = vadd.f32 %v651_v23, %v566_v24  ;;  %v573_v10 = vadd.f32 %v557_v27, %v472_v54  ;;  %v687_v23 = vmax.f32 %v671_v7, 0.0 }
  0xc7   : > { %v569_v48 = vadd.f32 %v553_v36, %v468_v34  ;;  %1325 = vperm.xlu1 %2428, %v2792_v3   ;;  %v605_v49 = vpop.permute.xlu1 %604  ;;  %v683_v50 = vmax.f32 %v667_v37, 0.0  ;;  %v674_v21 = vadd.f32 %v658_v17, %v573_v10  ;;  %v1176_v36 = vld [vmem:[%s2645_s25 + $0xd0] sm:$0xff]  ;;  %v458_v37 = vmul.f32 %v2771_v57, %v2766_v55 }
  0xc8   : > { %v504_v62 = vpop.permute.xlu0 %503  ;;  %v656_v13 = vmul.f32 %v2802_v11, %v605_v49  ;;  %v660_v55 = vmul.f32 %v2802_v11, %v2758_v44 }
  0xc9   : > { %v670_v56 = vadd.f32 %v654_v42, %v569_v48  ;;  %v555_v63 = vmul.f32 %v2785_v61, %v504_v62  ;;  %v699_v4 = vpack.c.bf16 %v684_v51, %v683_v50  ;;  %v690_v30 = vmax.f32 %v674_v21, 0.0 }
  0xca   : > { %v474_v47 = vadd.f32 %v2780_v60, %v458_v37 }
  0xcb   : > { %v686_v12 = vmax.f32 %v670_v56, 0.0  ;;  %v571_v38 = vadd.f32 %v555_v63, %v470_v52  ;;  %1329 = vperm.xlu1 %2428, %v2716_v28   ;;  %2212 = vmatprep.mubr.bf16.mxu0 %v699_v4  ;;  %v609_v9 = vpop.permute.xlu1 %608 }
  0xcc   : > { %v657_v15 = vmul.f32 %v2802_v11, %v609_v9  ;;  %v516_v16 = vpop.permute.xlu0 %515 }
  0xcd   : > { %v672_v18 = vadd.f32 %v656_v13, %v571_v38  ;;  %v700_v19 = vpack.c.bf16 %v686_v12, %v685_v5  ;;  %v558_v48 = vmul.f32 %v2785_v61, %v516_v16 }
  0xce   : > { %v673_v20 = vadd.f32 %v657_v15, %v572_v14 }
  0xcf   : > { %v688_v22 = vmax.f32 %v672_v18, 0.0  ;;  %2429 = vset.pattern.permute.xlu1 %v2535_v0  ;;  %2213 = vmatmul.mubr.bf16.vlgmr.msra.gmra.mxu0 %v700_v19  ;;  %v2449_v18 = vld [vmem:[%s3253_s5 + $0x38] sm:$0xff]   ;;  %v2450_v19 = vld [vmem:[%s3253_s5 + $0x30] sm:$0xff]  }
  0xd0   : > { %1422 = vperm.xlu1 %2429, %v2748_v39   ;;  %v408_v28 = vpop.permute.xlu1 %407  ;;  %v528_v24 = vpop.permute.xlu0 %527  ;;  %v689_v25 = vmax.f32 %v673_v20, 0.0  ;;  %2228 = vmatprep.subr.bf16.mxu1 %v2449_v18 }
  0xd1   : > { %v701_v26 = vpack.c.bf16 %v688_v22, %v687_v23  ;;  %v561_v13 = vmul.f32 %v2785_v61, %v528_v24  ;;  %2229 = vmatpush3.bf16.msra.mxu1 %v2449_v18  ;;  %v2455_v18 = vld [vmem:[%s3253_s5 + $0x8] sm:$0xff]  }
  0xd2   : > { %v702_v34 = vpack.c.bf16 %v690_v30, %v689_v25  ;;  %2230 = vmatprep.subr.bf16.mxu1 %v2450_v19  ;;  %v2452_v30 = vld [vmem:[%s3253_s5 + $0x20] sm:$0xff]  }
  0xd3   : > { %2216 = vmatprep.mubr.bf16.mxu0 %v701_v26 }
  0xd4   : > { %1426 = vperm.xlu1 %2429, %v2792_v3   ;;  %v418_v41 = vpop.permute.xlu1 %417  ;;  %v2839_v33 = vpop.permute.xlu0 %535  ;;  %v457_v3 = vmul.f32 %v2771_v57, %v408_v28 }
  0xd5   : > { %v459_v53 = vmul.f32 %v2771_v57, %v418_v41  ;;  %2231 = vmatpush3.bf16.msra.mxu1 %v2450_v19  ;;  %v2453_v41 = vld [vmem:[%s3253_s5 + $0x18] sm:$0xff]  }
  0xd6   : > { %v473_v49 = vadd.f32 %v2780_v60, %v457_v3 }
  0xd7   : > { %2217 = vmatmul.mubr.bf16.gmra.mxu0 %v702_v34  ;;  %v475_v5 = vadd.f32 %v2780_v60, %v459_v53  ;;  %v563_v53 = vmul.f32 %v2785_v61, %v2839_v33 }
  0xd8   : > { %2430 = vset.pattern.permute.xlu1 %v2536_v1  ;;  %v423_v35 = vpop.permute.xlu1 %422  ;;  %v574_v52 = vadd.f32 %v558_v48, %v473_v49 }
  0xd9   : > { %1225 = vperm.xlu1 %2430, %v2755_v43   ;;  %v2843_v39 = vpop.permute.xlu0 %632  ;;  %v460_v58 = vmul.f32 %v2771_v57, %v423_v35 }
  0xda   : > { %v663_v48 = vmul.f32 %v2802_v11, %v2843_v39 }
  0xdb   : > { %v476_v7 = vadd.f32 %v2780_v60, %v460_v58 }
  0xdd   : > { %1235 = vperm.xlu1 %2430, %v1176_v36   ;;  %v520_v40 = vpop.permute.xlu1 %519  ;;  %v2848_v42 = vpop.permute.xlu0 %644  ;;  %v577_v16 = vadd.f32 %v561_v13, %v476_v7 }
  0xde   : > { %v559_v45 = vmul.f32 %v2785_v61, %v520_v40 }
  0xe0   : > { %v575_v50 = vadd.f32 %v559_v45, %v474_v47  ;;  %v464_v47 = vmul.f32 %v2771_v57, %v2789_v2  ;;  %v666_v2 = vmul.f32 %v2802_v11, %v2848_v42  ;;  %v2454_v42 = vld [vmem:[%s3253_s5 + $0x10] sm:$0xff]  }
  0xe1   : > { %1240 = vperm.xlu1 %2430, %v2761_v46   ;;  %v524_v27 = vpop.permute.xlu1 %523  ;;  %v2856_v51 = vpop.permute.xlu0 %1406 }
  0xe2   : > { %v676_v62 = vadd.f32 %v660_v55, %v575_v50  ;;  %v560_v63 = vmul.f32 %v2785_v61, %v524_v27  ;;  %v480_v55 = vadd.f32 %v2780_v60, %v464_v47 }
  0xe4   : > { %v692_v10 = vmax.f32 %v676_v62, 0.0  ;;  %v576_v38 = vadd.f32 %v560_v63, %v475_v5 }
  0xe5   : > { %2431 = vset.pattern.permute.xlu1 %v2537_v8  ;;  %v2867_v6 = vpop.permute.xlu0 %1418 }
  0xe6   : > { %1337 = vperm.xlu1 %2431, %v2720_v29   ;;  %v617_v54 = vpop.permute.xlu1 %616 }
  0xe7   : > { %v659_v56 = vmul.f32 %v2802_v11, %v617_v54 }
  0xe9   : > { %v675_v4 = vadd.f32 %v659_v56, %v574_v52  ;;  %v2881_v20 = vpop.permute.xlu0 %1430 }
  0xea   : > { %1341 = vperm.xlu1 %2431, %v1176_v36   ;;  %v625_v44 = vpop.permute.xlu1 %624 }
  0xeb   : > { %v691_v29 = vmax.f32 %v675_v4, 0.0  ;;  %v661_v12 = vmul.f32 %v2802_v11, %v625_v44 }
  0xed   : > { %v703_v9 = vpack.c.bf16 %v692_v10, %v691_v29  ;;  %v677_v15 = vadd.f32 %v661_v12, %v576_v38  ;;  %v2886_v25 = vpop.permute.xlu0 %1438 }
  0xee   : > { %2432 = vset.pattern.permute.xlu1 %v2535_v0  ;;  %v629_v14 = vpop.permute.xlu1 %628 }
  0xef   : > { %v662_v17 = vmul.f32 %v2802_v11, %v629_v14  ;;  %1434 = vperm.xlu1 %2432, %v2755_v43   ;;  %2220 = vmatprep.mubr.bf16.mxu0 %v703_v9  ;;  %v693_v22 = vmax.f32 %v677_v15, 0.0  ;;  %v2451_v43 = vld [vmem:[%s3253_s5 + $0x28] sm:$0xff]  }
  0xf0   : > { %2232 = vmatprep.subr.bf16.mxu1 %v2451_v43 }
  0xf1   : > { %v678_v21 = vadd.f32 %v662_v17, %v577_v16  ;;  %2233 = vmatpush3.bf16.msra.mxu1 %v2451_v43 }
  0xf2   : > { %2234 = vmatprep.subr.bf16.mxu1 %v2452_v30  ;;  %v1191_v35 = vpop.permute.xlu0 %1190 }
  0xf3   : > { %v694_v23 = vmax.f32 %v678_v21, 0.0  ;;  %v433_v28 = vpop.permute.xlu1 %432  ;;  %1442 = vperm.xlu1 %2432, %v1176_v36   ;;  %v461_v36 = vmul.f32 %v2771_v57, %v2774_v59 }
  0xf5   : > { %v704_v24 = vpack.c.bf16 %v694_v23, %v693_v22  ;;  %2235 = vmatpush3.bf16.msra.mxu1 %v2452_v30  ;;  %v477_v45 = vadd.f32 %v2780_v60, %v461_v36  ;;  %v2456_v23 = vld [vmem:[%s3253_s5] sm:$0xff]  }
  0xf6   : > { %2236 = vmatprep.subr.bf16.mxu1 %v2453_v41  ;;  %v2900_v3 = vpop.permute.xlu0 %1205 }
  0xf7   : > { %2221 = vmatmul.mubr.bf16.gmra.mxu0 %v704_v24  ;;  %v438_v26 = vpop.permute.xlu1 %437  ;;  %1446 = vperm.xlu1 %2432, %v2761_v46   ;;  %v462_v46 = vmul.f32 %v2771_v57, %v433_v28  ;;  %v1268_v24 = vmul.f32 %v2771_v57, %v1191_v35 }
  0xf8   : > { %v463_v54 = vmul.f32 %v2771_v57, %v438_v26 }
  0xf9   : > { %2237 = vmatpush3.bf16.msra.mxu1 %v2453_v41  ;;  %v478_v59 = vadd.f32 %v2780_v60, %v462_v46  ;;  %v1284_v36 = vadd.f32 %v2780_v60, %v1268_v24 }
  0xfa   : > { %v2913_v58 = vpop.permute.xlu0 %1220  ;;  %v479_v5 = vadd.f32 %v2780_v60, %v463_v54  ;;  %2238 = vmatprep.subr.bf16.mxu1 %v2454_v42 }
  0xfb   : > { %2434 = vset.pattern.permute.xlu1 %v2536_v1  ;;  %v579_v63 = vadd.f32 %v563_v53, %v478_v59 }
  0xfc   : > { %v532_v34 = vpop.permute.xlu1 %531 }
  0xfd   : > { %v562_v40 = vmul.f32 %v2785_v61, %v532_v34  ;;  %2239 = vmatpush3.bf16.msra.mxu1 %v2454_v42 }
  0xfe   : > { %v2921_v38 = vpop.permute.xlu0 %1230  ;;  %2240 = vmatprep.subr.bf16.mxu1 %v2455_v18 }
  0xff   : > { %v578_v49 = vadd.f32 %v562_v40, %v477_v45 }
 0x100   : > { %v540_v37 = vpop.permute.xlu1 %539 }
 0x101   : > { %v679_v62 = vadd.f32 %v663_v48, %v578_v49  ;;  %v564_v39 = vmul.f32 %v2785_v61, %v540_v37  ;;  %2241 = vmatpush3.bf16.msra.mxu1 %v2455_v18  ;;  %v1470_v49 = vmul.f32 %v2802_v11, %v2856_v51  ;;  %v2972_v18 = vld [vmem:[%s3252_s4] ss:$0 sm:$0xff] }
 0x102   : > { %v2929_v21 = vpop.permute.xlu0 %1245  ;;  %2242 = vmatprep.subr.bf16.mxu1 %v2456_v23 }
 0x103   : > { %v695_v7 = vmax.f32 %v679_v62, 0.0  ;;  %v580_v10 = vadd.f32 %v564_v39, %v479_v5 }
 0x104   : > { %v544_v27 = vpop.permute.xlu1 %543 }
 0x105   : > { %v565_v50 = vmul.f32 %v2785_v61, %v544_v27  ;;  %2243 = vmatpush3.bf16.msra.mxu1 %v2456_v23 }
 0x106   : > { %v2934_v43 = vpop.permute.xlu0 %1260 }
 0x107   : > { %v581_v56 = vadd.f32 %v565_v50, %v480_v55 }
 0x109   : > { %v637_v52 = vpop.permute.xlu1 %636  ;;  %v682_v29 = vadd.f32 %v666_v2, %v581_v56 }
 0x10a   : > { %v664_v4 = vmul.f32 %v2802_v11, %v637_v52 }
 0x10b   : > { %v698_v15 = vmax.f32 %v682_v29, 0.0  ;;  %v1302_v34 = vpop.permute.xlu0 %1301 }
 0x10c   : > { %v680_v44 = vadd.f32 %v664_v4, %v579_v63  ;;  %v1368_v47 = vmul.f32 %v2785_v61, %v1302_v34 }
 0x10d   : > { %v641_v33 = vpop.permute.xlu1 %640 }
 0x10e   : > { %v696_v12 = vmax.f32 %v680_v44, 0.0  ;;  %v665_v13 = vmul.f32 %v2802_v11, %v641_v33 }
 0x10f   : > { %v1314_v2 = vpop.permute.xlu0 %1313 }
 0x110   : > { %v681_v9 = vadd.f32 %v665_v13, %v580_v10  ;;  %v705_v14 = vpack.c.bf16 %v696_v12, %v695_v7  ;;  %v1371_v39 = vmul.f32 %v2785_v61, %v1314_v2 }
 0x112   : > { %v697_v16 = vmax.f32 %v681_v9, 0.0  ;;  %2224 = vmatprep.mubr.bf16.mxu0 %v705_v14  ;;  %v1186_v17 = vpop.permute.xlu1 %1185  ;;  %v2457_v9 = vld [vmem:[%s3251_s3 + $0x38] sm:$0xff]   ;;  %v1179_v14 = vld [vmem:[%s2645_s25 + $0xe8] sm:$0xff] }
 0x113   : > { %v1267_v30 = vmul.f32 %v2771_v57, %v1186_v17  ;;  %2280 = vmatprep.subr.bf16.mxu1 %v2457_v9  ;;  %1250 = vperm.xlu1 %2434, %v1179_v14  }
 0x114   : > { %v706_v19 = vpack.c.bf16 %v698_v15, %v697_v16  ;;  %1353 = vperm.xlu0 %2435, %v1179_v14   ;;  %v1180_v15 = vld [vmem:[%s2645_s25 + $0xf0] sm:$0xff]  ;;  %s1985_s25 = scalar_lea.sflag [#allocation3], %s324_s27 }
 0x115   : > { %v1283_v46 = vadd.f32 %v2780_v60, %v1267_v30 }
 0x116   : > { %2225 = vmatmul.mubr.bf16.gmra.mxu0 %v706_v19  ;;  %v1196_v22 = vpop.permute.xlu1 %1195 }
 0x117   : > { %v1269_v26 = vmul.f32 %v2771_v57, %v1196_v22  ;;  %v1384_v50 = vadd.f32 %v1368_v47, %v1283_v46  ;;  %1255 = vperm.xlu1 %2434, %v1180_v15   ;;  %v2458_v47 = vld [vmem:[%s3251_s3 + $0x30] sm:$0xff]  }
 0x118   : > { %2437 = vset.pattern.permute.xlu0 %v2535_v0 }
 0x119   : > { %v1285_v40 = vadd.f32 %v2780_v60, %v1269_v26  ;;  %1450 = vperm.xlu0 %2437, %v2732_v31  }
 0x11a   : > { %v1201_v28 = vpop.permute.xlu1 %1200 }
 0x11b   : > { %v1270_v59 = vmul.f32 %v2771_v57, %v1201_v28  ;;  %2436 = vset.pattern.permute.xlu1 %v2537_v8 }
 0x11c   : > { %1349 = vperm.xlu1 %2436, %v2732_v31  }
 0x11d   : > { %v1286_v62 = vadd.f32 %v2780_v60, %v1270_v59  ;;  %1462 = vperm.xlu0 %2437, %v2736_v32  }
 0x11f   : > { %v1306_v41 = vpop.permute.xlu1 %1305  ;;  %v1387_v44 = vadd.f32 %v1371_v39, %v1286_v62 }
 0x120   : > { %v1369_v37 = vmul.f32 %v2785_v61, %v1306_v41  ;;  %1357 = vperm.xlu1 %2436, %v1180_v15  }
 0x122   : > { %v1385_v35 = vadd.f32 %v1369_v37, %v1284_v36 }
 0x123   : > { %v1310_v45 = vpop.permute.xlu1 %1309 }
 0x124   : > { %v1370_v27 = vmul.f32 %v2785_v61, %v1310_v45  ;;  %v1486_v53 = vadd.f32 %v1470_v49, %v1385_v35  ;;  %1361 = vperm.xlu1 %2436, %v2736_v32  }
 0x126   : > { %v1386_v48 = vadd.f32 %v1370_v27, %v1285_v40  ;;  %v1502_v63 = vmax.f32 %v1486_v53, 0.0  ;;  %v2459_v53 = vld [vmem:[%s3251_s3 + $0x28] sm:$0xff]  }
 0x128   : > { %v1403_v55 = vpop.permute.xlu1 %1402  ;;  %2438 = vset.pattern.permute.xlu1 %v2535_v0 }
 0x129   : > { %v1469_v54 = vmul.f32 %v2802_v11, %v1403_v55  ;;  %1454 = vperm.xlu1 %2438, %v1179_v14  }
 0x12b   : > { %v1485_v52 = vadd.f32 %v1469_v54, %v1384_v50 }
 0x12c   : > { %v1411_v56 = vpop.permute.xlu1 %1410 }
 0x12d   : > { %v1501_v4 = vmax.f32 %v1485_v52, 0.0  ;;  %v1471_v51 = vmul.f32 %v2802_v11, %v1411_v56  ;;  %1458 = vperm.xlu1 %2438, %v1180_v15   ;;  %v2460_v56 = vld [vmem:[%s3251_s3 + $0x20] sm:$0xff]  }
 0x12f   : > { %v1487_v5 = vadd.f32 %v1471_v51, %v1386_v48  ;;  %v2952_v7 = vpack.c.bf16 %v1502_v63, %v1501_v4  ;;  %v2461_v4 = vld [vmem:[%s3251_s3 + $0x18] sm:$0xff]  }
 0x130   : > { %v1415_v33 = vpop.permute.xlu1 %1414 }
 0x131   : > { %v1472_v10 = vmul.f32 %v2802_v11, %v1415_v33  ;;  %v1503_v29 = vmax.f32 %v1487_v5, 0.0  ;;  %v2462_v5 = vld [vmem:[%s3251_s3 + $0x10] sm:$0xff]  }
 0x133   : > { %v1488_v12 = vadd.f32 %v1472_v10, %v1387_v44  ;;  %v2463_v44 = vld [vmem:[%s3251_s3 + $0x8] sm:$0xff]   ;;  %v2464_v10 = vld [vmem:[%s3251_s3] sm:$0xff]  }
 0x135   : > { %v1504_v13 = vmax.f32 %v1488_v12, 0.0  ;;  %v2974_v19 = vpop.permute.xlu1 %1210 }
 0x137   : > { %v2955_v42 = vpack.c.bf16 %v1504_v13, %v1503_v29 }
 0x139   : > { %v2980_v34 = vpop.permute.xlu1 %1215 }
 0x13e   : > { %v2989_v50 = vpop.permute.xlu1 %1317 }
 0x142   : > { %v2997_v63 = vpop.permute.xlu1 %1325 }
 0x146   : > { %v3002_v51 = vpop.permute.xlu1 %1329 }
 0x14b   : > { %v1423_v33 = vpop.permute.xlu1 %1422 }
 0x14f   : > { %v3013_v29 = vpop.permute.xlu1 %1426 }
 0x18f   : > { %v2214_v16 = vpop.f32.mrf.mxu0 }
 0x190   : > { %v821_v32 = vadd.f32 %v2214_v16, %v2972_v18 }
 0x191   : > { %v812_v17 = vpop.f32.mrf.mxu0 }
 0x192   : > { %v813_v31 = vadd.f32 %v2972_v18, %v812_v17  ;;  %v877_v36 = vmax.f32 %v821_v32, 0.0 }
 0x193   : > { %v2215_v8 = vpop.f32.mrf.mxu0 }
 0x194   : > { %v824_v22 = vadd.f32 %v2215_v8, %v2972_v18  ;;  %v875_v30 = vmax.f32 %v813_v31, 0.0 }
 0x195   : > { %v815_v23 = vpop.f32.mrf.mxu0 }
 0x196   : > { %v816_v28 = vadd.f32 %v2972_v18, %v815_v23  ;;  %v878_v24 = vmax.f32 %v824_v22, 0.0 }
 0x197   : > { %v2218_v26 = vpop.f32.mrf.mxu0 }
 0x198   : > { %v876_v41 = vmax.f32 %v816_v28, 0.0  ;;  %v892_v46 = vpack.c.bf16 %v878_v24, %v877_v36  ;;  %v837_v48 = vadd.f32 %v2218_v26, %v2972_v18 }
 0x199   : > { %v828_v37 = vpop.f32.mrf.mxu0 }
 0x19a   : > { %v891_v40 = vpack.c.bf16 %v876_v41, %v875_v30  ;;  %v829_v27 = vadd.f32 %v2972_v18, %v828_v37  ;;  %v881_v62 = vmax.f32 %v837_v48, 0.0 }
 0x19b   : > { %v2219_v45 = vpop.f32.mrf.mxu0 }
 0x19c   : > { %v840_v35 = vadd.f32 %v2219_v45, %v2972_v18  ;;  %2244 = vmatprep.mubr.bf16.mxu1 %v891_v40  ;;  %v879_v54 = vmax.f32 %v829_v27, 0.0  ;;  %v1272_v40 = vmul.f32 %v2771_v57, %v2974_v19  ;;  %v1322_v45 = vpop.permute.xlu0 %1321  ;;  %v1372_v19 = vmul.f32 %v2785_v61, %v2989_v50 }
 0x19d   : > { %v831_v49 = vpop.f32.mrf.mxu0  ;;  %2245 = vmatmul.mubr.bf16.vlgmr.msra.gmra.mxu1 %v892_v46  ;;  %v1274_v50 = vmul.f32 %v2771_v57, %v2913_v58 }
 0x19e   : > { %v832_v59 = vadd.f32 %v2972_v18, %v831_v49  ;;  %2281 = vmatpush3.bf16.msra.mxu1 %v2457_v9  ;;  %v882_v55 = vmax.f32 %v840_v35, 0.0  ;;  %v1226_v9 = vpop.permute.xlu1 %1225  ;;  %v1288_v48 = vadd.f32 %v2780_v60, %v1272_v40  ;;  %v1373_v49 = vmul.f32 %v2785_v61, %v1322_v45 }
 0x19f   : > { %2282 = vmatprep.subr.bf16.mxu1 %v2458_v47 }
 0x1a0   : > { %v880_v2 = vmax.f32 %v832_v59, 0.0  ;;  %v894_v39 = vpack.c.bf16 %v882_v55, %v881_v62 }
 0x1a2   : > { %v893_v52 = vpack.c.bf16 %v880_v2, %v879_v54  ;;  %2283 = vmatpush3.bf16.msra.mxu1 %v2458_v47  ;;  %v1236_v28 = vpop.permute.xlu1 %1235  ;;  %v1271_v47 = vmul.f32 %v2771_v57, %v2900_v3 }
 0x1a3   : > { %2284 = vmatprep.subr.bf16.mxu1 %v2459_v53  ;;  %v1277_v45 = vmul.f32 %v2771_v57, %v1236_v28 }
 0x1a4   : > { %2248 = vmatprep.mubr.bf16.mxu1 %v893_v52  ;;  %v1287_v54 = vadd.f32 %v2780_v60, %v1271_v47 }
 0x1a5   : > { %2249 = vmatmul.mubr.bf16.gmra.mxu1 %v894_v39  ;;  %v1273_v39 = vmul.f32 %v2771_v57, %v2980_v34  ;;  %v1276_v34 = vmul.f32 %v2771_v57, %v2921_v38  ;;  %v1375_v38 = vmul.f32 %v2785_v61, %v3002_v51 }
 0x1a6   : > { %2285 = vmatpush3.bf16.msra.mxu1 %v2459_v53  ;;  %v3019_v41 = vpop.permute.xlu1 %1240 }
 0x1a7   : > { %2286 = vmatprep.subr.bf16.mxu1 %v2460_v56 }
 0x1aa   : > { %2287 = vmatpush3.bf16.msra.mxu1 %v2460_v56  ;;  %v1338_v36 = vpop.permute.xlu1 %1337  ;;  %v1389_v56 = vadd.f32 %v1373_v49, %v1288_v48 }
 0x1ab   : > { %2288 = vmatprep.subr.bf16.mxu1 %v2461_v4 }
 0x1ae   : > { %2289 = vmatpush3.bf16.msra.mxu1 %v2461_v4  ;;  %v3021_v37 = vpop.permute.xlu1 %1341  ;;  %v1474_v4 = vmul.f32 %v2802_v11, %v1423_v33  ;;  %v1289_v33 = vadd.f32 %v2780_v60, %v1273_v39 }
 0x1af   : > { %2290 = vmatprep.subr.bf16.mxu1 %v2462_v5  ;;  %v1378_v28 = vmul.f32 %v2785_v61, %v3021_v37 }
 0x1b2   : > { %2291 = vmatpush3.bf16.msra.mxu1 %v2462_v5  ;;  %v1435_v35 = vpop.permute.xlu1 %1434 }
 0x1b3   : > { %2292 = vmatprep.subr.bf16.mxu1 %v2463_v44 }
 0x1b6   : > { %2293 = vmatpush3.bf16.msra.mxu1 %v2463_v44  ;;  %v1443_v52 = vpop.permute.xlu1 %1442  ;;  %v1275_v44 = vmul.f32 %v2771_v57, %v1226_v9  ;;  %v1374_v9 = vmul.f32 %v2785_v61, %v2997_v63 }
 0x1b7   : > { %v2222_v12 = vpop.f32.mrf.mxu0  ;;  %2294 = vmatprep.subr.bf16.mxu1 %v2464_v10 }
 0x1b8   : > { %v853_v17 = vadd.f32 %v2222_v12, %v2972_v18  ;;  %v1291_v58 = vadd.f32 %v2780_v60, %v1275_v44 }
 0x1b9   : > { %v844_v13 = vpop.f32.mrf.mxu0 }
 0x1ba   : > { %2295 = vmatpush3.bf16.msra.mxu1 %v2464_v10  ;;  %v845_v15 = vadd.f32 %v2972_v18, %v844_v13  ;;  %v885_v24 = vmax.f32 %v853_v17, 0.0  ;;  %v1388_v13 = vadd.f32 %v1372_v19, %v1287_v54  ;;  %v1293_v54 = vadd.f32 %v2780_v60, %v1277_v45 }
 0x1bb   : > { %v2223_v14 = vpop.f32.mrf.mxu0 }
 0x1bc   : > { %v856_v16 = vadd.f32 %v2223_v14, %v2972_v18  ;;  %v883_v32 = vmax.f32 %v845_v15, 0.0  ;;  %v1334_v14 = vpop.permute.xlu0 %1333  ;;  %v1394_v39 = vadd.f32 %v1378_v28, %v1293_v54 }
 0x1bd   : > { %v847_v8 = vpop.f32.mrf.mxu0 }
 0x1be   : > { %v848_v31 = vadd.f32 %v2972_v18, %v847_v8  ;;  %v886_v22 = vmax.f32 %v856_v16, 0.0  ;;  %v1473_v16 = vmul.f32 %v2802_v11, %v2867_v6  ;;  %v1447_v8 = vpop.permute.xlu1 %1446 }
 0x1c0   : > { %v884_v23 = vmax.f32 %v848_v31, 0.0  ;;  %v896_v30 = vpack.c.bf16 %v886_v22, %v885_v24  ;;  %v1490_v31 = vadd.f32 %v1474_v4, %v1389_v56  ;;  %v1489_v6 = vadd.f32 %v1473_v16, %v1388_v13 }
 0x1c1   : > { %v1292_v24 = vadd.f32 %v2780_v60, %v1276_v34 }
 0x1c2   : > { %v895_v26 = vpack.c.bf16 %v884_v23, %v883_v32  ;;  %v1376_v32 = vmul.f32 %v2785_v61, %v1334_v14  ;;  %v1290_v23 = vadd.f32 %v2780_v60, %v1274_v50  ;;  %v1251_v63 = vpop.permute.xlu1 %1250  ;;  %v1506_v40 = vmax.f32 %v1490_v31, 0.0 }
 0x1c3   : > { %v1505_v48 = vmax.f32 %v1489_v6, 0.0  ;;  %v1280_v37 = vmul.f32 %v2771_v57, %v1251_v63 }
 0x1c4   : > { %2252 = vmatprep.mubr.bf16.mxu1 %v895_v26  ;;  %v1377_v26 = vmul.f32 %v2785_v61, %v1338_v36  ;;  %v1392_v47 = vadd.f32 %v1376_v32, %v1291_v58  ;;  %v1391_v51 = vadd.f32 %v1375_v38, %v1290_v23  ;;  %v1476_v36 = vmul.f32 %v2802_v11, %v2881_v20 }
 0x1c5   : > { %2253 = vmatmul.mubr.bf16.gmra.mxu1 %v896_v30  ;;  %v1390_v30 = vadd.f32 %v1374_v9, %v1289_v33  ;;  %v1296_v34 = vadd.f32 %v2780_v60, %v1280_v37 }
 0x1c6   : > { %v1393_v49 = vadd.f32 %v1377_v26, %v1292_v24  ;;  %v1492_v19 = vadd.f32 %v1476_v36, %v1391_v51 }
 0x1c8   : > { %v1508_v4 = vmax.f32 %v1492_v19, 0.0 }
 0x1d6   : > { %v2226_v46 = vpop.f32.mrf.mxu0 }
 0x1d7   : > { %v869_v2 = vadd.f32 %v2226_v46, %v2972_v18  ;;  %v1475_v46 = vmul.f32 %v2802_v11, %v3013_v29  ;;  %v1278_v29 = vmul.f32 %v2771_v57, %v3019_v41  ;;  %v1479_v41 = vmul.f32 %v2802_v11, %v1443_v52 }
 0x1d8   : > { %v860_v27 = vpop.f32.mrf.mxu0 }
 0x1d9   : > { %v861_v55 = vadd.f32 %v2972_v18, %v860_v27  ;;  %v889_v15 = vmax.f32 %v869_v2, 0.0  ;;  %v1477_v27 = vmul.f32 %v2802_v11, %v1435_v35 }
 0x1da   : > { %v2227_v59 = vpop.f32.mrf.mxu0 }
 0x1db   : > { %v872_v53 = vadd.f32 %v2227_v59, %v2972_v18  ;;  %v887_v10 = vmax.f32 %v861_v55, 0.0  ;;  %v1256_v59 = vpop.permute.xlu1 %1255  ;;  %v1491_v55 = vadd.f32 %v1475_v46, %v1390_v30  ;;  %v1493_v35 = vadd.f32 %v1477_v27, %v1392_v47 }
 0x1dc   : > { %v863_v62 = vpop.f32.mrf.mxu0 }
 0x1dd   : > { %v864_v3 = vadd.f32 %v2972_v18, %v863_v62  ;;  %v890_v5 = vmax.f32 %v872_v53, 0.0  ;;  %v1519_v53 = vpack.c.bf16 %v1506_v40, %v1505_v48  ;;  %v1507_v62 = vmax.f32 %v1491_v55, 0.0 }
 0x1de   : > { %v1509_v56 = vmax.f32 %v1493_v35, 0.0  ;;  %v3096_v35 = vld [vmem:[%s3254_s6] ss:$0 sm:$0xff] }
 0x1df   : > { %v888_v12 = vmax.f32 %v864_v3, 0.0  ;;  %v898_v22 = vpack.c.bf16 %v890_v5, %v889_v15  ;;  %v1350_v20 = vpop.permute.xlu1 %1349  ;;  %v1294_v3 = vadd.f32 %v2780_v60, %v1278_v29  ;;  %v1346_v5 = vpop.permute.xlu0 %1345  ;;  %v1520_v13 = vpack.c.bf16 %v1508_v4, %v1507_v62 }
 0x1e0   : > { %v1495_v15 = vadd.f32 %v1479_v41, %v1394_v39  ;;  %v1380_v52 = vmul.f32 %v2785_v61, %v1350_v20 }
 0x1e1   : > { %v897_v17 = vpack.c.bf16 %v888_v12, %v887_v10  ;;  %v1379_v10 = vmul.f32 %v2785_v61, %v1346_v5 }
 0x1e3   : > { %2256 = vmatprep.mubr.bf16.mxu1 %v897_v17  ;;  %v1358_v12 = vpop.permute.xlu1 %1357  ;;  %v1395_v16 = vadd.f32 %v1379_v10, %v1294_v3  ;;  %v1281_v17 = vmul.f32 %v2771_v57, %v1256_v59 }
 0x1e4   : > { %2257 = vmatmul.mubr.bf16.gmra.mxu1 %v898_v22  ;;  %v1382_v38 = vmul.f32 %v2785_v61, %v1358_v12 }
 0x1e5   : > { %2296 = vmatprep.mubr.bf16.mxu1 %v2952_v7  ;;  %v1478_v7 = vmul.f32 %v2802_v11, %v2886_v25  ;;  %v1279_v25 = vmul.f32 %v2771_v57, %v2929_v21  ;;  %v1282_v21 = vmul.f32 %v2771_v57, %v2934_v43  ;;  %v1511_v43 = vmax.f32 %v1495_v15, 0.0 }
 0x1e6   : > { %v1297_v23 = vadd.f32 %v2780_v60, %v1281_v17 }
 0x1e7   : > { %v1494_v2 = vadd.f32 %v1478_v7, %v1393_v49  ;;  %v1295_v50 = vadd.f32 %v2780_v60, %v1279_v25  ;;  %v1362_v31 = vpop.permute.xlu1 %1361  ;;  %v1298_v22 = vadd.f32 %v2780_v60, %v1282_v21 }
 0x1e8   : > { %v1383_v32 = vmul.f32 %v2785_v61, %v1362_v31  ;;  %v1398_v45 = vadd.f32 %v1382_v38, %v1297_v23 }
 0x1e9   : > { %v1510_v44 = vmax.f32 %v1494_v2, 0.0  ;;  %v1396_v58 = vadd.f32 %v1380_v52, %v1295_v50 }
 0x1ea   : > { %v1399_v40 = vadd.f32 %v1383_v32, %v1298_v22 }
 0x1eb   : > { %v1521_v14 = vpack.c.bf16 %v1510_v44, %v1509_v56  ;;  %v1455_v63 = vpop.permute.xlu1 %1454 }
 0x1ec   : > { %2297 = vmatmul.mubr.bf16.vlgmr.msra.gmra.mxu1 %v2955_v42  ;;  %v1480_v42 = vmul.f32 %v2802_v11, %v1447_v8  ;;  %v1354_v8 = vpop.permute.xlu0 %1353  ;;  %v1482_v30 = vmul.f32 %v2802_v11, %v1455_v63 }
 0x1ed   : > { %2300 = vmatprep.mubr.bf16.mxu1 %v1519_v53  ;;  %v1381_v9 = vmul.f32 %v2785_v61, %v1354_v8 }
 0x1ee   : > { %v1496_v33 = vadd.f32 %v1480_v42, %v1395_v16 }
 0x1ef   : > { %v1397_v24 = vadd.f32 %v1381_v9, %v1296_v34  ;;  %v1459_v49 = vpop.permute.xlu1 %1458 }
 0x1f0   : > { %v1512_v6 = vmax.f32 %v1496_v33, 0.0  ;;  %v1451_v26 = vpop.permute.xlu0 %1450  ;;  %v1483_v60 = vmul.f32 %v2802_v11, %v1459_v49 }
 0x1f1   : > { %v1481_v57 = vmul.f32 %v2802_v11, %v1451_v26  ;;  %v1498_v47 = vadd.f32 %v1482_v30, %v1397_v24 }
 0x1f2   : > { %v1522_v48 = vpack.c.bf16 %v1512_v6, %v1511_v43  ;;  %v1499_v7 = vadd.f32 %v1483_v60, %v1398_v45 }
 0x1f3   : > { %v1497_v46 = vadd.f32 %v1481_v57, %v1396_v58  ;;  %v1514_v59 = vmax.f32 %v1498_v47, 0.0 }
 0x1f4   : > { %2301 = vmatmul.mubr.bf16.gmra.mxu1 %v1520_v13  ;;  %v1463_v27 = vpop.permute.xlu0 %1462  ;;  %v1515_v53 = vmax.f32 %v1499_v7, 0.0 }
 0x1f5   : > { %2304 = vmatprep.mubr.bf16.mxu1 %v1521_v14  ;;  %v1484_v51 = vmul.f32 %v2802_v11, %v1463_v27  ;;  %v1513_v61 = vmax.f32 %v1497_v46, 0.0 }
 0x1f7   : > { %v1500_v36 = vadd.f32 %v1484_v51, %v1399_v40  ;;  %v1523_v54 = vpack.c.bf16 %v1514_v59, %v1513_v61 }
 0x1f9   : > { %v1516_v55 = vmax.f32 %v1500_v36, 0.0 }
 0x1fb   : > { %v1524_v29 = vpack.c.bf16 %v1516_v55, %v1515_v53 }
 0x1fc   : > { %2305 = vmatmul.mubr.bf16.gmra.mxu1 %v1522_v48  ;;  %v2538_v48 = vmov 0.0  }
 0x1fd   : > { %2308 = vmatprep.mubr.bf16.mxu1 %v1523_v54  ;;  %2260 = vmatprep.subr.bf16.mxu0 %v2538_v48 }
 0x1fe   : > { %2344 = vmatprep.subr.bf16.mxu1 %v2538_v48  ;;  %2276 = vmatprep.mubr.msk.bf16.mxu0 %vm2539_vm0, %v2538_v48 }
 0x204   : > { %2309 = vmatmul.mubr.bf16.gmra.mxu1 %v1524_v29 }
 0x205   : > { %2360 = vmatprep.mubr.msk.bf16.mxu1 %vm2539_vm0, %v2538_v48 }
 0x25d   : > { %v2246_v28 = vpop.f32.mrf.mxu1 }
 0x25e   : > { %v1013_v39 = vadd.f32 %v2246_v28, %v3096_v35 }
 0x25f   : > { %v1004_v19 = vpop.f32.mrf.mxu1 }
 0x260   : > { %v1005_v11 = vadd.f32 %v3096_v35, %v1004_v19  ;;  %v1069_v4 = vmax.f32 %v1013_v39, 0.0 }
 0x261   : > { %v2247_v2 = vpop.f32.mrf.mxu1 }
 0x262   : > { %v1067_v20 = vmax.f32 %v1005_v11, 0.0  ;;  %v1016_v37 = vadd.f32 %v2247_v2, %v3096_v35 }
 0x263   : > { %v1007_v25 = vpop.f32.mrf.mxu1 }
 0x264   : > { %v1008_v62 = vadd.f32 %v3096_v35, %v1007_v25  ;;  %1083 = vxpose.xlu1.b32.start [1/16] %v1067_v20, 128  ;;  %v1070_v44 = vmax.f32 %v1016_v37, 0.0 }
 0x265   : > { %v2250_v3 = vpop.f32.mrf.mxu1 }
 0x266   : > { %v1068_v56 = vmax.f32 %v1008_v62, 0.0  ;;  %v1029_v21 = vadd.f32 %v2250_v3, %v3096_v35 }
 0x267   : > { %v1020_v41 = vpop.f32.mrf.mxu1 }
 0x268   : > { %1084 = vxpose.xlu1.b32.cont [2/16] %v1068_v56, 128  ;;  %v1021_v42 = vadd.f32 %v3096_v35, %v1020_v41  ;;  %v1073_v14 = vmax.f32 %v1029_v21, 0.0 }
 0x269   : > { %v2251_v5 = vpop.f32.mrf.mxu1 }
 0x26a   : > { %v1071_v12 = vmax.f32 %v1021_v42, 0.0  ;;  %v1032_v15 = vadd.f32 %v2251_v5, %v3096_v35 }
 0x26b   : > { %v1023_v10 = vpop.f32.mrf.mxu1 }
 0x26c   : > { %1085 = vxpose.xlu1.b32.cont [3/16] %v1069_v4, 128  ;;  %v1024_v50 = vadd.f32 %v3096_v35, %v1023_v10  ;;  %v1074_v52 = vmax.f32 %v1032_v15, 0.0 }
 0x26e   : > { %v1072_v13 = vmax.f32 %v1024_v50, 0.0 }
 0x270   : > { %1086 = vxpose.xlu1.b32.cont [4/16] %v1070_v44, 128 }
 0x274   : > { %1087 = vxpose.xlu1.b32.cont [5/16] %v1071_v12, 128 }
 0x278   : > { %1088 = vxpose.xlu1.b32.cont [6/16] %v1072_v13, 128  ;;  %v2465_v13 = vld [vmem:[%s3253_s5 + $0x38] sm:$0xff]  }
 0x27c   : > { %1089 = vxpose.xlu1.b32.cont [7/16] %v1073_v14, 128 }
 0x280   : > { %1090 = vxpose.xlu1.b32.cont [8/16] %v1074_v52, 128  ;;  %v1123_v52 = vld [vmem:[%s3255_s7] sm:$0xf] }
 0x285   : > { %v2254_v16 = vpop.f32.mrf.mxu1 }
 0x286   : > { %v1045_v22 = vadd.f32 %v2254_v16, %v3096_v35 }
 0x287   : > { %v1036_v34 = vpop.f32.mrf.mxu1 }
 0x288   : > { %v1037_v17 = vadd.f32 %v3096_v35, %v1036_v34  ;;  %v1077_v58 = vmax.f32 %v1045_v22, 0.0  ;;  %v2466_v34 = vld [vmem:[%s3253_s5 + $0x30] sm:$0xff]  }
 0x289   : > { %v2255_v8 = vpop.f32.mrf.mxu1 }
 0x28a   : > { %v1075_v33 = vmax.f32 %v1037_v17, 0.0  ;;  %v1048_v32 = vadd.f32 %v2255_v8, %v3096_v35 }
 0x28b   : > { %v1039_v9 = vpop.f32.mrf.mxu1 }
 0x28c   : > { %v1040_v31 = vadd.f32 %v3096_v35, %v1039_v9  ;;  %1091 = vxpose.xlu1.b32.cont [9/16] %v1075_v33, 128  ;;  %v1078_v23 = vmax.f32 %v1048_v32, 0.0  ;;  %v2467_v33 = vld [vmem:[%s3253_s5 + $0x28] sm:$0xff]   ;;  %v2470_v32 = vld [vmem:[%s3253_s5 + $0x10] sm:$0xff]  }
 0x28e   : > { %v1076_v43 = vmax.f32 %v1040_v31, 0.0  ;;  %v2468_v31 = vld [vmem:[%s3253_s5 + $0x20] sm:$0xff]  }
 0x290   : > { %1092 = vxpose.xlu1.b32.cont [10/16] %v1076_v43, 128  ;;  %v2469_v43 = vld [vmem:[%s3253_s5 + $0x18] sm:$0xff]  }
 0x294   : > { %1093 = vxpose.xlu1.b32.cont [11/16] %v1077_v58, 128 }
 0x298   : > { %1094 = vxpose.xlu1.b32.cont [12/16] %v1078_v23, 128 }
 0x2a4   : > { %v2258_v6 = vpop.f32.mrf.mxu1 }
 0x2a5   : > { %v1061_v40 = vadd.f32 %v2258_v6, %v3096_v35  ;;  %v2471_v6 = vld [vmem:[%s3253_s5 + $0x8] sm:$0xff]  }
 0x2a6   : > { %v1052_v38 = vpop.f32.mrf.mxu1 }
 0x2a7   : > { %v1053_v24 = vadd.f32 %v3096_v35, %v1052_v38  ;;  %v1081_v45 = vmax.f32 %v1061_v40, 0.0 }
 0x2a8   : > { %v2259_v26 = vpop.f32.mrf.mxu1 }
 0x2a9   : > { %v1079_v57 = vmax.f32 %v1053_v24, 0.0  ;;  %v1064_v47 = vadd.f32 %v2259_v26, %v3096_v35 }
 0x2aa   : > { %v1055_v63 = vpop.f32.mrf.mxu1 }
 0x2ab   : > { %v1056_v30 = vadd.f32 %v3096_v35, %v1055_v63  ;;  %1095 = vxpose.xlu1.b32.cont [13/16] %v1079_v57, 128  ;;  %v1082_v27 = vmax.f32 %v1064_v47, 0.0  ;;  %v2472_v57 = vld [vmem:[%s3253_s5] sm:$0xff]  }
 0x2ac   : > { %v2298_v41 = vpop.f32.mrf.mxu1 }
 0x2ad   : > { %v1080_v46 = vmax.f32 %v1056_v30, 0.0  ;;  %v1639_v24 = vadd.f32 %v2298_v41, %v2972_v18 }
 0x2ae   : > { %v1630_v37 = vpop.f32.mrf.mxu1 }
 0x2af   : > { %1096 = vxpose.xlu1.b32.cont [14/16] %v1080_v46, 128  ;;  %v1631_v12 = vadd.f32 %v2972_v18, %v1630_v37  ;;  %v1695_v46 = vmax.f32 %v1639_v24, 0.0 }
 0x2b0   : > { %v2299_v44 = vpop.f32.mrf.mxu1 }
 0x2b1   : > { %v1693_v14 = vmax.f32 %v1631_v12, 0.0  ;;  %v1642_v26 = vadd.f32 %v2299_v44, %v2972_v18 }
 0x2b2   : > { %v1633_v10 = vpop.f32.mrf.mxu1 }
 0x2b3   : > { %1097 = vxpose.xlu1.b32.cont [15/16] %v1081_v45, 128  ;;  %v1634_v50 = vadd.f32 %v2972_v18, %v1633_v10  ;;  %v1696_v45 = vmax.f32 %v1642_v26, 0.0 }
 0x2b4   : > { %v2302_v21 = vpop.f32.mrf.mxu1 }
 0x2b5   : > { %v1694_v15 = vmax.f32 %v1634_v50, 0.0 }
 0x2b6   : > { %v1646_v16 = vpop.f32.mrf.mxu1 }
 0x2b7   : > { %1098 = vxpose.xlu1.b32.end [16/16] %v1082_v27, 128  ;;  %v1709_v17 = vpack.c.bf16 %v1694_v15, %v1693_v14  ;;  %v1647_v40 = vadd.f32 %v2972_v18, %v1646_v16 }
 0x2b8   : > { %v2303_v8 = vpop.f32.mrf.mxu1 }
 0x2ba   : > { %v1649_v9 = vpop.f32.mrf.mxu1 }
 0x2bb   : > { %v1650_v63 = vadd.f32 %v2972_v18, %v1649_v9 }
 0x2bc   : > { %v2306_v22 = vpop.f32.mrf.mxu1 }
 0x2bd   : > { %v1698_v47 = vmax.f32 %v1650_v63, 0.0 }
 0x2be   : > { %v1662_v58 = vpop.f32.mrf.mxu1 }
 0x2c0   : > { %v2307_v23 = vpop.f32.mrf.mxu1 }
 0x2c2   : > { %v1665_v38 = vpop.f32.mrf.mxu1 }
 0x2c4   : > { %v2310_v30 = vpop.f32.mrf.mxu1 }
 0x2c6   : > { %v1678_v27 = vpop.f32.mrf.mxu1 }
 0x2f7   : > { %v1099_v51 = vpop.trf.xlu1 }
 0x2fb   : > { %v1100_v49 = vpop.trf.xlu1 }
 0x2fc   : > { %v1115_v60 = vpack.c.bf16 %v1100_v49, %v1099_v51  ;;  %v1697_v51 = vmax.f32 %v1647_v40, 0.0  ;;  %v1710_v49 = vpack.c.bf16 %v1696_v45, %v1695_v46 }
 0x2ff   : > { %v1101_v61 = vpop.trf.xlu1 }
 0x303   : > { %v1102_v59 = vpop.trf.xlu1 }
 0x304   : > { %v1116_v36 = vpack.c.bf16 %v1102_v59, %v1101_v61  ;;  %v1711_v61 = vpack.c.bf16 %v1698_v47, %v1697_v51  ;;  %v1663_v59 = vadd.f32 %v2972_v18, %v1662_v58 }
 0x307   : > { %v1103_v7 = vpop.trf.xlu1 }
 0x30b   : > { %v1104_v55 = vpop.trf.xlu1 }
 0x30c   : > { %v1117_v42 = vpack.c.bf16 %v1104_v55, %v1103_v7  ;;  %v1655_v7 = vadd.f32 %v2302_v21, %v2972_v18  ;;  %v2311_v55 = vpop.f32.mrf.mxu1 }
 0x30d   : > { %v1690_v44 = vadd.f32 %v2311_v55, %v2972_v18 }
 0x30f   : > { %v1105_v53 = vpop.trf.xlu1  ;;  %v1708_v12 = vmax.f32 %v1690_v44, 0.0 }
 0x313   : > { %v1106_v54 = vpop.trf.xlu1 }
 0x314   : > { %v1118_v5 = vpack.c.bf16 %v1106_v54, %v1105_v53  ;;  %v1701_v54 = vmax.f32 %v1663_v59, 0.0 }
 0x317   : > { %v1107_v29 = vpop.trf.xlu1 }
 0x31b   : > { %v1108_v28 = vpop.trf.xlu1 }
 0x31c   : > { %v1119_v4 = vpack.c.bf16 %v1108_v28, %v1107_v29  ;;  %v1699_v28 = vmax.f32 %v1655_v7, 0.0 }
 0x31f   : > { %v1109_v19 = vpop.trf.xlu1 }
 0x323   : > { %v1110_v11 = vpop.trf.xlu1 }
 0x324   : > { %v1120_v56 = vpack.c.bf16 %v1110_v11, %v1109_v19  ;;  %v1681_v19 = vpop.f32.mrf.mxu1 }
 0x327   : > { %v1111_v2 = vpop.trf.xlu1 }
 0x32b   : > { %v1112_v20 = vpop.trf.xlu1 }
 0x32c   : > { %v1121_v39 = vpack.c.bf16 %v1112_v20, %v1111_v2  ;;  %v1671_v2 = vadd.f32 %v2306_v22, %v2972_v18  ;;  %v1674_v20 = vadd.f32 %v2307_v23, %v2972_v18 }
 0x32f   : > { %v1113_v25 = vpop.trf.xlu1 }
 0x333   : > { %v1114_v62 = vpop.trf.xlu1 }
 0x334   : > { %v1122_v3 = vpack.c.bf16 %v1114_v62, %v1113_v25  ;;  %v1679_v62 = vadd.f32 %v2972_v18, %v1678_v27 }
 0x336   : > { %2261 = vmatpush3.bf16.msra.mxu0 %v1122_v3  ;;  %v1682_v3 = vadd.f32 %v2972_v18, %v1681_v19  ;;  %v1705_v41 = vmax.f32 %v1679_v62, 0.0 }
 0x337   : > { %2262 = vmatprep.subr.bf16.mxu0 %v2538_v48 }
 0x33a   : > { %2263 = vmatpush3.bf16.msra.mxu0 %v1121_v39  ;;  %v1703_v39 = vmax.f32 %v1671_v2, 0.0 }
 0x33b   : > { %2264 = vmatprep.subr.bf16.mxu0 %v2538_v48 }
 0x33e   : > { %2265 = vmatpush3.bf16.msra.mxu0 %v1120_v56  ;;  %v1704_v56 = vmax.f32 %v1674_v20, 0.0 }
 0x33f   : > { %2266 = vmatprep.subr.bf16.mxu0 %v2538_v48 }
 0x340   : > { %v1714_v37 = vpack.c.bf16 %v1704_v56, %v1703_v39 }
 0x342   : > { %2267 = vmatpush3.bf16.msra.mxu0 %v1119_v4  ;;  %v1706_v4 = vmax.f32 %v1682_v3, 0.0 }
 0x343   : > { %2268 = vmatprep.subr.bf16.mxu0 %v2538_v48 }
 0x346   : > { %2269 = vmatpush3.bf16.msra.mxu0 %v1118_v5  ;;  %v1687_v5 = vadd.f32 %v2310_v30, %v2972_v18 }
 0x347   : > { %2270 = vmatprep.subr.bf16.mxu0 %v2538_v48 }
 0x348   : > { %v1707_v10 = vmax.f32 %v1687_v5, 0.0 }
 0x34a   : > { %2271 = vmatpush3.bf16.msra.mxu0 %v1117_v42  ;;  %v1715_v42 = vpack.c.bf16 %v1706_v4, %v1705_v41  ;;  %v1716_v50 = vpack.c.bf16 %v1708_v12, %v1707_v10  ;;  %v342_v4 = vld [vmem:[%s3256_s8] sm:$0x3] }
 0x34b   : > { %2272 = vmatprep.subr.bf16.mxu0 %v2538_v48 }
 0x34e   : > { %2273 = vmatpush3.bf16.msra.mxu0 %v1116_v36  ;;  %v1666_v36 = vadd.f32 %v2972_v18, %v1665_v38 }
 0x34f   : > { %2274 = vmatprep.subr.bf16.mxu0 %v2538_v48 }
 0x350   : > { %v1702_v29 = vmax.f32 %v1666_v36, 0.0 }
 0x352   : > { %2275 = vmatpush3.bf16.msra.mxu0 %v1115_v60  ;;  %v1658_v60 = vadd.f32 %v2303_v8, %v2972_v18  ;;  %v1713_v25 = vpack.c.bf16 %v1702_v29, %v1701_v54 }
 0x353   : > { %2312 = vmatprep.subr.bf16.mxu0 %v2465_v13 }
 0x354   : > { %v1700_v53 = vmax.f32 %v1658_v60, 0.0 }
 0x355   : > { %2277 = vmatmul.mubr.bf16.vlgmr.msra.gmra.mxu0 %v1123_v52 }
 0x356   : > { %2313 = vmatpush3.bf16.msra.mxu0 %v2465_v13  ;;  %2328 = vmatprep.mubr.bf16.mxu0 %v1709_v17  ;;  %v1712_v11 = vpack.c.bf16 %v1700_v53, %v1699_v28 }
 0x357   : > { %2314 = vmatprep.subr.bf16.mxu0 %v2466_v34 }
 0x35a   : > { %2315 = vmatpush3.bf16.msra.mxu0 %v2466_v34 }
 0x35b   : > { %2316 = vmatprep.subr.bf16.mxu0 %v2467_v33 }
 0x35e   : > { %2317 = vmatpush3.bf16.msra.mxu0 %v2467_v33 }
 0x35f   : > { %2318 = vmatprep.subr.bf16.mxu0 %v2468_v31 }
 0x362   : > { %2319 = vmatpush3.bf16.msra.mxu0 %v2468_v31 }
 0x363   : > { %2320 = vmatprep.subr.bf16.mxu0 %v2469_v43 }
 0x366   : > { %2321 = vmatpush3.bf16.msra.mxu0 %v2469_v43 }
 0x367   : > { %2322 = vmatprep.subr.bf16.mxu0 %v2470_v32 }
 0x36a   : > { %2323 = vmatpush3.bf16.msra.mxu0 %v2470_v32 }
 0x36b   : > { %2324 = vmatprep.subr.bf16.mxu0 %v2471_v6 }
 0x36e   : > { %2325 = vmatpush3.bf16.msra.mxu0 %v2471_v6 }
 0x36f   : > { %2326 = vmatprep.subr.bf16.mxu0 %v2472_v57 }
 0x372   : > { %2327 = vmatpush3.bf16.msra.mxu0 %v2472_v57 }
 0x375   : > { %2329 = vmatmul.mubr.bf16.vlgmr.msra.gmra.mxu0 %v1710_v49 }
 0x376   : > { %2332 = vmatprep.mubr.bf16.mxu0 %v1711_v61 }
 0x37d   : > { %2333 = vmatmul.mubr.bf16.gmra.mxu0 %v1712_v11 }
 0x37e   : > { %2336 = vmatprep.mubr.bf16.mxu0 %v1713_v25 }
 0x385   : > { %2337 = vmatmul.mubr.bf16.gmra.mxu0 %v1714_v37 }
 0x386   : > { %2340 = vmatprep.mubr.bf16.mxu0 %v1715_v42 }
 0x38d   : > { %2341 = vmatmul.mubr.bf16.gmra.mxu0 %v1716_v50 }
 0x415   : > { %v3168_v21 = vpop.f32.mrf.mxu0 }
 0x417   : > { %v2278_v13 = vpop.f32.mrf.mxu0 }
 0x419   : > { %v1161_v14 = vpop.f32.mrf.mxu0 }
 0x41b   : > { %v2279_v15 = vpop.f32.mrf.mxu0 }
 0x435   : > { %v2330_v52 = vpop.f32.mrf.mxu0 }
 0x436   : > { %v1831_v31 = vadd.f32 %v2330_v52, %v3096_v35 }
 0x437   : > { %v1822_v16 = vpop.f32.mrf.mxu0 }
 0x438   : > { %v1823_v34 = vadd.f32 %v3096_v35, %v1822_v16  ;;  %v1887_v58 = vmax.f32 %v1831_v31, 0.0 }
 0x439   : > { %v2331_v17 = vpop.f32.mrf.mxu0 }
 0x43a   : > { %v1885_v8 = vmax.f32 %v1823_v34, 0.0  ;;  %v1834_v32 = vadd.f32 %v2331_v17, %v3096_v35 }
 0x43b   : > { %v1825_v33 = vpop.f32.mrf.mxu0 }
 0x43c   : > { %v1826_v18 = vadd.f32 %v3096_v35, %v1825_v33  ;;  %1901 = vxpose.xlu0.b32.start [1/16] %v1885_v8, 128  ;;  %v1888_v6 = vmax.f32 %v1834_v32, 0.0 }
 0x43d   : > { %v2334_v9 = vpop.f32.mrf.mxu0 }
 0x43e   : > { %v1886_v22 = vmax.f32 %v1826_v18, 0.0  ;;  %v1847_v30 = vadd.f32 %v2334_v9, %v3096_v35 }
 0x43f   : > { %v1838_v43 = vpop.f32.mrf.mxu0 }
 0x440   : > { %1902 = vxpose.xlu0.b32.cont [2/16] %v1886_v22, 128  ;;  %v1839_v38 = vadd.f32 %v3096_v35, %v1838_v43  ;;  %v1891_v45 = vmax.f32 %v1847_v30, 0.0 }
 0x441   : > { %v2335_v23 = vpop.f32.mrf.mxu0 }
 0x442   : > { %v1889_v26 = vmax.f32 %v1839_v38, 0.0  ;;  %v1850_v47 = vadd.f32 %v2335_v23, %v3096_v35 }
 0x443   : > { %v1841_v24 = vpop.f32.mrf.mxu0 }
 0x444   : > { %1903 = vxpose.xlu0.b32.cont [3/16] %v1887_v58, 128  ;;  %v1842_v57 = vadd.f32 %v3096_v35, %v1841_v24  ;;  %v1892_v51 = vmax.f32 %v1850_v47, 0.0  ;;  %v1941_v58 = vld [vmem:[%s3255_s7] sm:$0xf] }
 0x445   : > { %v2338_v63 = vpop.f32.mrf.mxu0 }
 0x446   : > { %v1890_v40 = vmax.f32 %v1842_v57, 0.0  ;;  %v1863_v7 = vadd.f32 %v2338_v63, %v3096_v35 }
 0x447   : > { %v1854_v46 = vpop.f32.mrf.mxu0 }
 0x448   : > { %1904 = vxpose.xlu0.b32.cont [4/16] %v1888_v6, 128  ;;  %v1855_v49 = vadd.f32 %v3096_v35, %v1854_v46  ;;  %v1895_v54 = vmax.f32 %v1863_v7, 0.0 }
 0x449   : > { %v2339_v27 = vpop.f32.mrf.mxu0 }
 0x44a   : > { %v1893_v61 = vmax.f32 %v1855_v49, 0.0  ;;  %v1866_v29 = vadd.f32 %v2339_v27, %v3096_v35 }
 0x44b   : > { %v1857_v60 = vpop.f32.mrf.mxu0 }
 0x44c   : > { %1905 = vxpose.xlu0.b32.cont [5/16] %v1889_v26, 128  ;;  %v1858_v59 = vadd.f32 %v3096_v35, %v1857_v60  ;;  %v1896_v19 = vmax.f32 %v1866_v29, 0.0 }
 0x44d   : > { %v2342_v36 = vpop.f32.mrf.mxu0 }
 0x44e   : > { %v1894_v55 = vmax.f32 %v1858_v59, 0.0  ;;  %v1879_v62 = vadd.f32 %v2342_v36, %v3096_v35 }
 0x44f   : > { %v1870_v53 = vpop.f32.mrf.mxu0 }
 0x450   : > { %1906 = vxpose.xlu0.b32.cont [6/16] %v1890_v40, 128  ;;  %v1871_v11 = vadd.f32 %v3096_v35, %v1870_v53  ;;  %v1899_v39 = vmax.f32 %v1879_v62, 0.0 }
 0x451   : > { %v2343_v28 = vpop.f32.mrf.mxu0 }
 0x452   : > { %v1897_v20 = vmax.f32 %v1871_v11, 0.0  ;;  %v1882_v56 = vadd.f32 %v2343_v28, %v3096_v35 }
 0x453   : > { %v1873_v2 = vpop.f32.mrf.mxu0 }
 0x454   : > { %1907 = vxpose.xlu0.b32.cont [7/16] %v1891_v45, 128  ;;  %v1874_v25 = vadd.f32 %v3096_v35, %v1873_v2  ;;  %v1900_v41 = vmax.f32 %v1882_v56, 0.0 }
 0x456   : > { %v1898_v3 = vmax.f32 %v1874_v25, 0.0 }
 0x458   : > { %1908 = vxpose.xlu0.b32.cont [8/16] %v1892_v51, 128 }
 0x45c   : > { %1909 = vxpose.xlu0.b32.cont [9/16] %v1893_v61, 128 }
 0x460   : > { %1910 = vxpose.xlu0.b32.cont [10/16] %v1894_v55, 128 }
 0x464   : > { %1911 = vxpose.xlu0.b32.cont [11/16] %v1895_v54, 128 }
 0x468   : > { %1912 = vxpose.xlu0.b32.cont [12/16] %v1896_v19, 128 }
 0x46c   : > { %1913 = vxpose.xlu0.b32.cont [13/16] %v1897_v20, 128 }
 0x470   : > { %1914 = vxpose.xlu0.b32.cont [14/16] %v1898_v3, 128 }
 0x474   : > { %1915 = vxpose.xlu0.b32.cont [15/16] %v1899_v39, 128 }
 0x478   : > { %1916 = vxpose.xlu0.b32.end [16/16] %v1900_v41, 128 }
 0x4a1   : > { %2439 = vset.pattern.permute.xlu0 %v2536_v1 }
 0x4a2   : > { %345 = vperm.xlu0 %2439, %v342_v4  }
 0x4a6   : > { %2440 = vset.pattern.permute.xlu0 %v2535_v0 }
 0x4b8   : > { %v1917_v37 = vpop.trf.xlu0 }
 0x4bc   : > { %v1918_v5 = vpop.trf.xlu0 }
 0x4bd   : > { %v1933_v44 = vpack.c.bf16 %v1918_v5, %v1917_v37 }
 0x4c0   : > { %v1919_v42 = vpop.trf.xlu0 }
 0x4c4   : > { %v1920_v10 = vpop.trf.xlu0 }
 0x4c5   : > { %v1934_v12 = vpack.c.bf16 %v1920_v10, %v1919_v42 }
 0x4c8   : > { %v1921_v50 = vpop.trf.xlu0 }
 0x4cc   : > { %v1922_v35 = vpop.trf.xlu0 }
 0x4cd   : > { %v1935_v43 = vpack.c.bf16 %v1922_v35, %v1921_v50 }
 0x4d0   : > { %v1923_v13 = vpop.trf.xlu0 }
 0x4d4   : > { %v1924_v14 = vpop.trf.xlu0 }
 0x4d5   : > { %v1936_v22 = vpack.c.bf16 %v1924_v14, %v1923_v13 }
 0x4d8   : > { %v1925_v15 = vpop.trf.xlu0 }
 0x4dc   : > { %v1926_v52 = vpop.trf.xlu0 }
 0x4dd   : > { %v1937_v31 = vpack.c.bf16 %v1926_v52, %v1925_v15 }
 0x4e0   : > { %v1927_v16 = vpop.trf.xlu0 }
 0x4e4   : > { %v1928_v34 = vpop.trf.xlu0 }
 0x4e5   : > { %v1938_v9 = vpack.c.bf16 %v1928_v34, %v1927_v16 }
 0x4e8   : > { %v1929_v17 = vpop.trf.xlu0 }
 0x4ec   : > { %v1930_v8 = vpop.trf.xlu0 }
 0x4ed   : > { %v1939_v0 = vpack.c.bf16 %v1930_v8, %v1929_v17 }
 0x4f0   : > { %v1931_v1 = vpop.trf.xlu0 }
 0x4f4   : > { %v1932_v33 = vpop.trf.xlu0 }
 0x4f5   : > { %v1940_v18 = vpack.c.bf16 %v1932_v33, %v1931_v1 }
 0x4f7   : > { %2345 = vmatpush3.bf16.msra.mxu1 %v1940_v18 }
 0x4f8   : > { %2346 = vmatprep.subr.bf16.mxu1 %v2538_v48 }
 0x4fb   : > { %2347 = vmatpush3.bf16.msra.mxu1 %v1939_v0 }
 0x4fc   : > { %2348 = vmatprep.subr.bf16.mxu1 %v2538_v48 }
 0x4ff   : > { %2349 = vmatpush3.bf16.msra.mxu1 %v1938_v9 }
 0x500   : > { %2350 = vmatprep.subr.bf16.mxu1 %v2538_v48 }
 0x503   : > { %2351 = vmatpush3.bf16.msra.mxu1 %v1937_v31 }
 0x504   : > { %2352 = vmatprep.subr.bf16.mxu1 %v2538_v48 }
 0x507   : > { %2353 = vmatpush3.bf16.msra.mxu1 %v1936_v22 }
 0x508   : > { %2354 = vmatprep.subr.bf16.mxu1 %v2538_v48 }
 0x50b   : > { %2355 = vmatpush3.bf16.msra.mxu1 %v1935_v43 }
 0x50c   : > { %2356 = vmatprep.subr.bf16.mxu1 %v2538_v48 }
 0x50f   : > { %2357 = vmatpush3.bf16.msra.mxu1 %v1934_v12 }
 0x510   : > { %2358 = vmatprep.subr.bf16.mxu1 %v2538_v48 }
 0x513   : > { %2359 = vmatpush3.bf16.msra.mxu1 %v1933_v44 }
 0x516   : > { %2361 = vmatmul.mubr.bf16.vlgmr.msra.gmra.mxu1 %v1941_v58 }
 0x51d   : > { %v346_v32 = vpop.permute.xlu0 %345 }
 0x51e   : > { %v1164_v23 = vadd.f32 %v3168_v21, %v346_v32 }
 0x520   : > { %1165 = vst [vmem:[%s326_s29] sm:$0x3] %v1164_v23 }
 0x5d6   : > { %v1976_v6 = vpop.f32.mrf.mxu1 }
 0x5d7   : > { %v1982_v38 = vadd.f32 %v1976_v6, %v346_v32 }
 0x5d8   : > { %v2362_v48 = vpop.f32.mrf.mxu1 }
 0x5d9   : > { %1983 = vst [vmem:[%s326_s29 + $0x2] sm:$0x3] %v1982_v38 }
 0x5da   : > { %v1979_v24 = vpop.f32.mrf.mxu1 }
 0x5db   : > { %2486 = shalt.err (!%p2483_p3)
}
 0x5dc   : > { %s2487_s28 = scalar_lea.hbm %s3207_s22, 64  ;;  %s2491_s14 = scalar_lea.hbm %s3257_s9, 128 }
 0x5dd   : > { %p2488_p4 = scmp.ne.s32.totalorder %s3207_s22, %s2487_s28  ;;  %p2492_p9 = scmp.lt.s32.totalorder %s3207_s22, %s3257_s9 }
 0x5de   : > { %p2493_p10 = scmp.lt.s32.totalorder %s2491_s14, %s2487_s28 }
 0x5df   : > { %p2489_p7 = pnand %p2488_p4, %p2629_p5 }
 0x5e0   : > { %p2494_p11 = por %p2493_p10, %p2492_p9 }
 0x5e1   : > { %p2490_p8 = pneg %p2489_p7 }
 0x5e3   : > { %p2495_p12 = pnand %p2494_p11, %p2490_p8 }
 0x5e5   : > { %2498 = shalt.err (!%p2495_p12)
}
 0x5e6   : > { %2364 = dma.vmem_to_hbm [thread:$0]  (%p2629_p5), %s3209_s16, 64, %s3207_s22, %s1985_s25   ;;  %v2363_v21 = vpop.f32.mrf.mxu1 }
 0x5e7 PF: > { %p2370_p13 = scmp.ge.s32.totalorder %s2533_s12, 2  ;;  %s2011_s23 = sand.u32 1, %s2521_s30  }
 0x5e8   : > { %s2012_s13 = scalar_lea.sflag [#allocation3], %s2011_s23 }
 0x5e9   : > { %p2367_p0 = pnand %p2370_p13, %p2633_p6 }
 0x5eb   : > { %p2368_p1 = pneg %p2367_p0 }
 0x5ed   : > { %2516 = dma.done.wait (%p2368_p1), %s2012_s13, 64  }
 0x5ee   : > { %2518 = vsyncadd (%p2368_p1), %s2012_s13, 4294967232  ;;  %p19_p2 = scmp.ge.s32.totalorder %s2616_s15, 4   ;;  %s3260_s30 = smov %s2525_s10 }
 0x5ef   : > { %s3261_s10 = smov %s2529_s11  ;;  %s3262_s11 = smov %s2627_s18 }
 0x5f0   : > { %s3263_s12 = smov %s2616_s15  ;;  %21 = sbr.rel (!%p19_p2) target bundleno = 3 (0x3), region = 91 }
 0x5f5   :  { %2017 = vsyncpa [#allocation3], 1 }
 0x5f6   :  { %2019 = vsyncpa [#allocation3 + $0x1], 1 }

</bundles_post_ra>
